<compile_context>
chip_gen: v5e
topology: v5e:2x2
jax: 0.10.0
libtpu: 0.0.40
codegen_flags: <defaults>
</compile_context>

<pallas_src>
import functools
import numpy as np
import jax
import jax.numpy as jnp
from jax.experimental import pallas as pl
from jax.experimental.pallas import tpu as pltpu


def _round_up(x, m):
    return (x + m - 1) // m * m


# -----------------------------------------------------------------------------
# Stage A: bilinear term  y[b, :] = sum_k r[b, k] * (x[b, :] @ W[k])
# Grid: (batch tiles [parallel], relation tiles [arbitrary, reduction last]).
# No u = r ⊗ x materialization: each relation contributes one small MXU matmul
# scaled by r on the VPU; f32 accumulation in VMEM scratch, bf16 y written once.
# -----------------------------------------------------------------------------
def bilinear_kernel(r_ref, x_ref, w_ref, y_ref, acc_ref, *, tile_m):
    @pl.when(pl.program_id(1) == 0)
    def _():
        acc_ref[...] = jnp.zeros_like(acc_ref)

    x = x_ref[...]                       # (tile_b, d1) bf16
    acc = acc_ref[...]                   # (tile_b, d1) f32
    for j in range(tile_m):              # static unroll: compile-time indices
        acc = acc + r_ref[j] * jnp.dot(x, w_ref[j],
                                       preferred_element_type=jnp.float32)
    acc_ref[...] = acc

    @pl.when(pl.program_id(1) == pl.num_programs(1) - 1)
    def _():
        y_ref[...] = acc_ref[...].astype(y_ref.dtype)   # cast to bf16 once


# -----------------------------------------------------------------------------
# Stage B: pred = sigmoid(y @ (E*s1).T + E@b1)   (bn1 folded offline, cached)
# Grid: entity tiles [parallel]; lane-dense bf16 output tile.
# -----------------------------------------------------------------------------
def projection_kernel(y_ref, et_ref, bias_ref, out_ref):
    logits = jnp.dot(y_ref[...], et_ref[...],
                     preferred_element_type=jnp.float32) + bias_ref[...]
    # sigmoid(z) = 0.5*(tanh(z/2)+1): one EUP transcendental instead of exp+div.
    out_ref[...] = (0.5 * (jnp.tanh(0.5 * logits) + 1.0)).astype(out_ref.dtype)


# -----------------------------------------------------------------------------
# Parameter-only preprocessing (call ONCE per parameter set, reuse per forward)
# -----------------------------------------------------------------------------
def prepare_tucker(params, *, eps=1e-5, tile_m_target=32, tile_n_target=2048):
    E = params["E"].astype(jnp.float32)          # (nE, d1)
    R = params["R"].astype(jnp.float32)          # (nR, d2)
    W = params["W"].astype(jnp.float32)          # (d2, d1, d1)
    nE, d1 = E.shape
    d2 = R.shape[1]

    # Fold BatchNorms (eval mode, running stats) into scale + shift.
    s0 = params["bn0_gamma"] / jnp.sqrt(params["bn0_var"] + eps)
    b0 = params["bn0_beta"] - params["bn0_mean"] * s0
    s1 = params["bn1_gamma"] / jnp.sqrt(params["bn1_var"] + eps)
    b1 = params["bn1_beta"] - params["bn1_mean"] * s1

    # Stage A core tensor: pad the relation axis to a tile multiple, bf16.
    tile_m = min(d2, tile_m_target)
    d2p = _round_up(d2, tile_m)
    w3 = jnp.zeros((d2p, d1, d1), jnp.bfloat16).at[:d2].set(
        W.astype(jnp.bfloat16))

    # Stage B: bn1 folded into the projection; adaptive lane-dense tiling.
    Np0 = _round_up(nE, 128)
    tile_n = min(tile_n_target, Np0)
    if Np0 // tile_n < 2 and Np0 >= 256:     # keep >=2 parallel steps (v7x TCs)
        tile_n = _round_up((Np0 + 1) // 2, 128)
    Np = _round_up(nE, tile_n)
    et = (E * s1[None, :]).T                 # (d1, nE)
    bias = E @ b1                            # (nE,)
    et_p = jnp.zeros((d1, Np), jnp.bfloat16).at[:, :nE].set(
        et.astype(jnp.bfloat16))
    bias_p = jnp.zeros((1, Np), jnp.float32).at[:, :nE].set(bias[None, :])

    return dict(E=E, R=R, w3=w3, et_p=et_p, bias_p=bias_p, s0=s0, b0=b0,
                dims=(nE, d1, d2, d2p, Np), tiles=(tile_m, tile_n))


# -----------------------------------------------------------------------------
# Forward (per request)
# -----------------------------------------------------------------------------
def tucker_forward(e1_idx, r_idx, prep, *,
                   tile_b_target=128, vmem_limit=48 * 1024 * 1024):
    E, R = prep["E"], prep["R"]
    w3, et_p, bias_p = prep["w3"], prep["et_p"], prep["bias_p"]
    s0, b0 = prep["s0"], prep["b0"]
    nE, d1, d2, d2p, Np = prep["dims"]
    tile_m, tile_n = prep["tiles"]

    B = e1_idx.shape[0]
    Bp = _round_up(B, 16)                    # bf16 sublane packing
    if Bp > tile_b_target:
        Bp = _round_up(B, tile_b_target)
        tile_b = tile_b_target
    else:
        tile_b = Bp

    # XLA glue: gathers + bn0 (+ input_dropout = identity in eval mode).
    e1 = jnp.take(E, e1_idx, axis=0)                     # (B, d1)
    r = jnp.take(R, r_idx, axis=0)                       # (B, d2)
    x = e1 * s0[None, :] + b0[None, :]                   # bn0

    x_p = jnp.zeros((Bp, d1), jnp.bfloat16).at[:B].set(x.astype(jnp.bfloat16))
    # Relations laid out (d2p, Bp, 1): r_ref[j] is a (Bp, 1) sublane row-scale.
    r3 = jnp.zeros((d2p, Bp, 1), jnp.float32).at[:d2, :B, 0].set(r.T)

    # -------- Stage A: bilinear contraction (MXU) -----------------------------
    y = pl.pallas_call(
        functools.partial(bilinear_kernel, tile_m=tile_m),
        out_shape=jax.ShapeDtypeStruct((Bp, d1), jnp.bfloat16),
        grid=(Bp // tile_b, d2p // tile_m),
        in_specs=[
            pl.BlockSpec((tile_m, tile_b, 1), lambda b, k: (k, b, 0)),  # r
            pl.BlockSpec((tile_b, d1),        lambda b, k: (b, 0)),     # x
            pl.BlockSpec((tile_m, d1, d1),    lambda b, k: (k, 0, 0)),  # W
        ],
        out_specs=pl.BlockSpec((tile_b, d1), lambda b, k: (b, 0)),  # resident
        scratch_shapes=[pltpu.VMEM((tile_b, d1), jnp.float32)],
        compiler_params=pltpu.CompilerParams(
            dimension_semantics=("parallel", "arbitrary"),
            vmem_limit_bytes=vmem_limit),
    )(r3, x_p, w3)

    # -------- Stage B: projection over all entities + sigmoid -----------------
    pred = pl.pallas_call(
        projection_kernel,
        out_shape=jax.ShapeDtypeStruct((Bp, Np), jnp.bfloat16),
        grid=(Np // tile_n,),
        in_specs=[
            pl.BlockSpec((Bp, d1),     lambda n: (0, 0)),   # y (resident, bf16)
            pl.BlockSpec((d1, tile_n), lambda n: (0, n)),   # E_scaled.T tile
            pl.BlockSpec((1, tile_n),  lambda n: (0, n)),   # bias tile
        ],
        out_specs=pl.BlockSpec((Bp, tile_n), lambda n: (0, n)),
        compiler_params=pltpu.CompilerParams(
            dimension_semantics=("parallel",),
            vmem_limit_bytes=vmem_limit),
    )(y, et_p, bias_p)

    return pred[:B, :nE]


# -----------------------------------------------------------------------------
# Pure-JAX f32 reference of the same (eval-mode) forward
# -----------------------------------------------------------------------------
def tucker_reference(e1_idx, r_idx, params, eps=1e-5):
    E, R, W = params["E"], params["R"], params["W"]
    nE, d1 = E.shape
    _, d2 = R.shape
    e1 = E[e1_idx]
    x = (e1 - params["bn0_mean"]) / jnp.sqrt(params["bn0_var"] + eps) \
        * params["bn0_gamma"] + params["bn0_beta"]
    r = R[r_idx]
    W_mat = (r @ W.reshape(d2, d1 * d1)).reshape(-1, d1, d1)
    x = jnp.einsum("bi,bij->bj", x, W_mat)
    x = (x - params["bn1_mean"]) / jnp.sqrt(params["bn1_var"] + eps) \
        * params["bn1_gamma"] + params["bn1_beta"]
    return jax.nn.sigmoid(x @ E.T)


def make_params(key, n_entities, n_relations, d1, d2):
    ks = jax.random.split(key, 8)
    # xavier_normal_: std = sqrt(2 / (fan_in + fan_out))
    std_e = float(np.sqrt(2.0 / (n_entities + d1)))
    std_r = float(np.sqrt(2.0 / (n_relations + d2)))
    return {
        "E": std_e * jax.random.normal(ks[0], (n_entities, d1), jnp.float32),
        "R": std_r * jax.random.normal(ks[1], (n_relations, d2), jnp.float32),
        "W": jax.random.uniform(ks[2], (d2, d1, d1), jnp.float32, -1.0, 1.0),
        "bn0_gamma": 1.0 + 0.1 * jax.random.normal(ks[3], (d1,), jnp.float32),
        "bn0_beta": 0.05 * jax.random.normal(ks[4], (d1,), jnp.float32),
        "bn0_mean": 0.01 * jax.random.normal(ks[5], (d1,), jnp.float32),
        "bn0_var": jnp.ones((d1,), jnp.float32) * 0.9,
        "bn1_gamma": 1.0 + 0.1 * jax.random.normal(ks[6], (d1,), jnp.float32),
        "bn1_beta": 0.05 * jax.random.normal(ks[7], (d1,), jnp.float32),
        "bn1_mean": jnp.zeros((d1,), jnp.float32),
        "bn1_var": jnp.ones((d1,), jnp.float32),
    }


if __name__ == "__main__":
    n_entities, n_relations = 512, 16
    d1, d2 = 128, 32
    B = 8

    key = jax.random.PRNGKey(0)
    kp, ke, kr = jax.random.split(key, 3)
    params = make_params(kp, n_entities, n_relations, d1, d2)
    e1_idx = jax.random.randint(ke, (B,), 0, n_entities, dtype=jnp.int32)
    r_idx = jax.random.randint(kr, (B,), 0, n_relations, dtype=jnp.int32)

    prep = prepare_tucker(params)            # parameter-only packing: once
    pred = tucker_forward(e1_idx, r_idx, prep)
    pred = jax.block_until_ready(pred)

    ref = tucker_reference(e1_idx, r_idx, params)
    assert pred.shape == (B, n_entities)
    # bf16 matmul operands + bf16 output (f32 accumulation) vs f32 reference.
    np.testing.assert_allclose(np.asarray(pred.astype(jnp.float32)),
                               np.asarray(ref), rtol=5e-2, atol=1e-2)
    print("KERNEL_OK")
</pallas_src>

<mosaic_0001>
module attributes {stable_mosaic.version = 11 : i64} {
  func.func @bilinear_kernel(%arg0: i32, %arg1: i32, %arg2: memref<32x16x1xf32, #tpu.memory_space<vmem>>, %arg3: memref<16x128xbf16, #tpu.memory_space<vmem>>, %arg4: memref<32x128x128xbf16, #tpu.memory_space<vmem>>, %arg5: memref<16x128xbf16, #tpu.memory_space<vmem>>, %arg6: memref<16x128xf32, #tpu.memory_space<vmem>>) attributes {dimension_semantics = [#tpu.dimension_semantics<parallel>, #tpu.dimension_semantics<arbitrary>], iteration_bounds = array<i64: 1, 1>, scalar_prefetch = 0 : i64, scratch_operands = 1 : i64, tpu.core_type = #tpu.core_type<tc>, window_params = [{transform_indices = @transform_0, window_bounds = array<i64: 32, 16, 1>}, {transform_indices = @transform_1, window_bounds = array<i64: 16, 128>}, {transform_indices = @transform_2, window_bounds = array<i64: 32, 128, 128>}, {transform_indices = @transform_3, window_bounds = array<i64: 16, 128>}]} {
    %c0_i32 = arith.constant 0 : i32
    %0 = arith.cmpi eq, %arg1, %c0_i32 : i32
    %1 = arith.extui %0 : i1 to i32
    %c0_i32_0 = arith.constant 0 : i32
    %2 = arith.cmpi ne, %1, %c0_i32_0 : i32
    scf.if %2 {
      %cst_200 = arith.constant 0.000000e+00 : f32
      %265 = vector.broadcast %cst_200 : f32 to vector<16x128xf32>
      %c0_201 = arith.constant 0 : index
      %c0_202 = arith.constant 0 : index
      %266 = vector.load %arg6[%c0_201, %c0_202] : memref<16x128xf32, #tpu.memory_space<vmem>>, vector<16x128xf32>
      tpu.vector_store %arg6[%c0_201, %c0_202], %265 {strides = array<i32>} : memref<16x128xf32, #tpu.memory_space<vmem>>, vector<16x128xf32>,
    } else {
    }
    %c0 = arith.constant 0 : index
    %c0_1 = arith.constant 0 : index
    %3 = vector.load %arg3[%c0, %c0_1] : memref<16x128xbf16, #tpu.memory_space<vmem>>, vector<16x128xbf16>
    %c0_2 = arith.constant 0 : index
    %c0_3 = arith.constant 0 : index
    %4 = vector.load %arg6[%c0_2, %c0_3] : memref<16x128xf32, #tpu.memory_space<vmem>>, vector<16x128xf32>
    %c0_4 = arith.constant 0 : index
    %c0_5 = arith.constant 0 : index
    %c0_6 = arith.constant 0 : index
    %5 = vector.load %arg2[%c0_4, %c0_5, %c0_6] : memref<32x16x1xf32, #tpu.memory_space<vmem>>, vector<1x16x1xf32>
    %6 = vector.shape_cast %5 : vector<1x16x1xf32> to vector<16x1xf32>
    %c0_7 = arith.constant 0 : index
    %c0_8 = arith.constant 0 : index
    %c0_9 = arith.constant 0 : index
    %7 = vector.load %arg4[%c0_7, %c0_8, %c0_9] : memref<32x128x128xbf16, #tpu.memory_space<vmem>>, vector<1x128x128xbf16>
    %8 = vector.shape_cast %7 : vector<1x128x128xbf16> to vector<128x128xbf16>
    %cst = arith.constant dense<0.000000e+00> : vector<16x128xf32>
    %9 = tpu.matmul %3, %8, %cst {dimension_numbers = #tpu.dot_dimension_numbers<[1], [0], [0], [1], [0, 0, 1, 1], [], []>} : vector<16x128xbf16>, vector<128x128xbf16>, vector<16x128xf32> -> vector<16x128xf32>
    %10 = vector.broadcast %6 : vector<16x1xf32> to vector<16x128xf32>
    %11 = arith.mulf %10, %9 : vector<16x128xf32>
    %12 = arith.addf %4, %11 : vector<16x128xf32>
    %c1 = arith.constant 1 : index
    %c0_10 = arith.constant 0 : index
    %c0_11 = arith.constant 0 : index
    %13 = vector.load %arg2[%c1, %c0_10, %c0_11] : memref<32x16x1xf32, #tpu.memory_space<vmem>>, vector<1x16x1xf32>
    %14 = vector.shape_cast %13 : vector<1x16x1xf32> to vector<16x1xf32>
    %c1_12 = arith.constant 1 : index
    %c0_13 = arith.constant 0 : index
    %c0_14 = arith.constant 0 : index
    %15 = vector.load %arg4[%c1_12, %c0_13, %c0_14] : memref<32x128x128xbf16, #tpu.memory_space<vmem>>, vector<1x128x128xbf16>
    %16 = vector.shape_cast %15 : vector<1x128x128xbf16> to vector<128x128xbf16>
    %cst_15 = arith.constant dense<0.000000e+00> : vector<16x128xf32>
    %17 = tpu.matmul %3, %16, %cst_15 {dimension_numbers = #tpu.dot_dimension_numbers<[1], [0], [0], [1], [0, 0, 1, 1], [], []>} : vector<16x128xbf16>, vector<128x128xbf16>, vector<16x128xf32> -> vector<16x128xf32>
    %18 = vector.broadcast %14 : vector<16x1xf32> to vector<16x128xf32>
    %19 = arith.mulf %18, %17 : vector<16x128xf32>
    %20 = arith.addf %12, %19 : vector<16x128xf32>
    %c2 = arith.constant 2 : index
    %c0_16 = arith.constant 0 : index
    %c0_17 = arith.constant 0 : index
    %21 = vector.load %arg2[%c2, %c0_16, %c0_17] : memref<32x16x1xf32, #tpu.memory_space<vmem>>, vector<1x16x1xf32>
    %22 = vector.shape_cast %21 : vector<1x16x1xf32> to vector<16x1xf32>
    %c2_18 = arith.constant 2 : index
    %c0_19 = arith.constant 0 : index
    %c0_20 = arith.constant 0 : index
    %23 = vector.load %arg4[%c2_18, %c0_19, %c0_20] : memref<32x128x128xbf16, #tpu.memory_space<vmem>>, vector<1x128x128xbf16>
    %24 = vector.shape_cast %23 : vector<1x128x128xbf16> to vector<128x128xbf16>
    %cst_21 = arith.constant dense<0.000000e+00> : vector<16x128xf32>
    %25 = tpu.matmul %3, %24, %cst_21 {dimension_numbers = #tpu.dot_dimension_numbers<[1], [0], [0], [1], [0, 0, 1, 1], [], []>} : vector<16x128xbf16>, vector<128x128xbf16>, vector<16x128xf32> -> vector<16x128xf32>
    %26 = vector.broadcast %22 : vector<16x1xf32> to vector<16x128xf32>
    %27 = arith.mulf %26, %25 : vector<16x128xf32>
    %28 = arith.addf %20, %27 : vector<16x128xf32>
    %c3 = arith.constant 3 : index
    %c0_22 = arith.constant 0 : index
    %c0_23 = arith.constant 0 : index
    %29 = vector.load %arg2[%c3, %c0_22, %c0_23] : memref<32x16x1xf32, #tpu.memory_space<vmem>>, vector<1x16x1xf32>
    %30 = vector.shape_cast %29 : vector<1x16x1xf32> to vector<16x1xf32>
    %c3_24 = arith.constant 3 : index
    %c0_25 = arith.constant 0 : index
    %c0_26 = arith.constant 0 : index
    %31 = vector.load %arg4[%c3_24, %c0_25, %c0_26] : memref<32x128x128xbf16, #tpu.memory_space<vmem>>, vector<1x128x128xbf16>
    %32 = vector.shape_cast %31 : vector<1x128x128xbf16> to vector<128x128xbf16>
    %cst_27 = arith.constant dense<0.000000e+00> : vector<16x128xf32>
    %33 = tpu.matmul %3, %32, %cst_27 {dimension_numbers = #tpu.dot_dimension_numbers<[1], [0], [0], [1], [0, 0, 1, 1], [], []>} : vector<16x128xbf16>, vector<128x128xbf16>, vector<16x128xf32> -> vector<16x128xf32>
    %34 = vector.broadcast %30 : vector<16x1xf32> to vector<16x128xf32>
    %35 = arith.mulf %34, %33 : vector<16x128xf32>
    %36 = arith.addf %28, %35 : vector<16x128xf32>
    %c4 = arith.constant 4 : index
    %c0_28 = arith.constant 0 : index
    %c0_29 = arith.constant 0 : index
    %37 = vector.load %arg2[%c4, %c0_28, %c0_29] : memref<32x16x1xf32, #tpu.memory_space<vmem>>, vector<1x16x1xf32>
    %38 = vector.shape_cast %37 : vector<1x16x1xf32> to vector<16x1xf32>
    %c4_30 = arith.constant 4 : index
    %c0_31 = arith.constant 0 : index
    %c0_32 = arith.constant 0 : index
    %39 = vector.load %arg4[%c4_30, %c0_31, %c0_32] : memref<32x128x128xbf16, #tpu.memory_space<vmem>>, vector<1x128x128xbf16>
    %40 = vector.shape_cast %39 : vector<1x128x128xbf16> to vector<128x128xbf16>
    %cst_33 = arith.constant dense<0.000000e+00> : vector<16x128xf32>
    %41 = tpu.matmul %3, %40, %cst_33 {dimension_numbers = #tpu.dot_dimension_numbers<[1], [0], [0], [1], [0, 0, 1, 1], [], []>} : vector<16x128xbf16>, vector<128x128xbf16>, vector<16x128xf32> -> vector<16x128xf32>
    %42 = vector.broadcast %38 : vector<16x1xf32> to vector<16x128xf32>
    %43 = arith.mulf %42, %41 : vector<16x128xf32>
    %44 = arith.addf %36, %43 : vector<16x128xf32>
    %c5 = arith.constant 5 : index
    %c0_34 = arith.constant 0 : index
    %c0_35 = arith.constant 0 : index
    %45 = vector.load %arg2[%c5, %c0_34, %c0_35] : memref<32x16x1xf32, #tpu.memory_space<vmem>>, vector<1x16x1xf32>
    %46 = vector.shape_cast %45 : vector<1x16x1xf32> to vector<16x1xf32>
    %c5_36 = arith.constant 5 : index
    %c0_37 = arith.constant 0 : index
    %c0_38 = arith.constant 0 : index
    %47 = vector.load %arg4[%c5_36, %c0_37, %c0_38] : memref<32x128x128xbf16, #tpu.memory_space<vmem>>, vector<1x128x128xbf16>
    %48 = vector.shape_cast %47 : vector<1x128x128xbf16> to vector<128x128xbf16>
    %cst_39 = arith.constant dense<0.000000e+00> : vector<16x128xf32>
    %49 = tpu.matmul %3, %48, %cst_39 {dimension_numbers = #tpu.dot_dimension_numbers<[1], [0], [0], [1], [0, 0, 1, 1], [], []>} : vector<16x128xbf16>, vector<128x128xbf16>, vector<16x128xf32> -> vector<16x128xf32>
    %50 = vector.broadcast %46 : vector<16x1xf32> to vector<16x128xf32>
    %51 = arith.mulf %50, %49 : vector<16x128xf32>
    %52 = arith.addf %44, %51 : vector<16x128xf32>
    %c6 = arith.constant 6 : index
    %c0_40 = arith.constant 0 : index
    %c0_41 = arith.constant 0 : index
    %53 = vector.load %arg2[%c6, %c0_40, %c0_41] : memref<32x16x1xf32, #tpu.memory_space<vmem>>, vector<1x16x1xf32>
    %54 = vector.shape_cast %53 : vector<1x16x1xf32> to vector<16x1xf32>
    %c6_42 = arith.constant 6 : index
    %c0_43 = arith.constant 0 : index
    %c0_44 = arith.constant 0 : index
    %55 = vector.load %arg4[%c6_42, %c0_43, %c0_44] : memref<32x128x128xbf16, #tpu.memory_space<vmem>>, vector<1x128x128xbf16>
    %56 = vector.shape_cast %55 : vector<1x128x128xbf16> to vector<128x128xbf16>
    %cst_45 = arith.constant dense<0.000000e+00> : vector<16x128xf32>
    %57 = tpu.matmul %3, %56, %cst_45 {dimension_numbers = #tpu.dot_dimension_numbers<[1], [0], [0], [1], [0, 0, 1, 1], [], []>} : vector<16x128xbf16>, vector<128x128xbf16>, vector<16x128xf32> -> vector<16x128xf32>
    %58 = vector.broadcast %54 : vector<16x1xf32> to vector<16x128xf32>
    %59 = arith.mulf %58, %57 : vector<16x128xf32>
    %60 = arith.addf %52, %59 : vector<16x128xf32>
    %c7 = arith.constant 7 : index
    %c0_46 = arith.constant 0 : index
    %c0_47 = arith.constant 0 : index
    %61 = vector.load %arg2[%c7, %c0_46, %c0_47] : memref<32x16x1xf32, #tpu.memory_space<vmem>>, vector<1x16x1xf32>
    %62 = vector.shape_cast %61 : vector<1x16x1xf32> to vector<16x1xf32>
    %c7_48 = arith.constant 7 : index
    %c0_49 = arith.constant 0 : index
    %c0_50 = arith.constant 0 : index
    %63 = vector.load %arg4[%c7_48, %c0_49, %c0_50] : memref<32x128x128xbf16, #tpu.memory_space<vmem>>, vector<1x128x128xbf16>
    %64 = vector.shape_cast %63 : vector<1x128x128xbf16> to vector<128x128xbf16>
    %cst_51 = arith.constant dense<0.000000e+00> : vector<16x128xf32>
    %65 = tpu.matmul %3, %64, %cst_51 {dimension_numbers = #tpu.dot_dimension_numbers<[1], [0], [0], [1], [0, 0, 1, 1], [], []>} : vector<16x128xbf16>, vector<128x128xbf16>, vector<16x128xf32> -> vector<16x128xf32>
    %66 = vector.broadcast %62 : vector<16x1xf32> to vector<16x128xf32>
    %67 = arith.mulf %66, %65 : vector<16x128xf32>
    %68 = arith.addf %60, %67 : vector<16x128xf32>
    %c8 = arith.constant 8 : index
    %c0_52 = arith.constant 0 : index
    %c0_53 = arith.constant 0 : index
    %69 = vector.load %arg2[%c8, %c0_52, %c0_53] : memref<32x16x1xf32, #tpu.memory_space<vmem>>, vector<1x16x1xf32>
    %70 = vector.shape_cast %69 : vector<1x16x1xf32> to vector<16x1xf32>
    %c8_54 = arith.constant 8 : index
    %c0_55 = arith.constant 0 : index
    %c0_56 = arith.constant 0 : index
    %71 = vector.load %arg4[%c8_54, %c0_55, %c0_56] : memref<32x128x128xbf16, #tpu.memory_space<vmem>>, vector<1x128x128xbf16>
    %72 = vector.shape_cast %71 : vector<1x128x128xbf16> to vector<128x128xbf16>
    %cst_57 = arith.constant dense<0.000000e+00> : vector<16x128xf32>
    %73 = tpu.matmul %3, %72, %cst_57 {dimension_numbers = #tpu.dot_dimension_numbers<[1], [0], [0], [1], [0, 0, 1, 1], [], []>} : vector<16x128xbf16>, vector<128x128xbf16>, vector<16x128xf32> -> vector<16x128xf32>
    %74 = vector.broadcast %70 : vector<16x1xf32> to vector<16x128xf32>
    %75 = arith.mulf %74, %73 : vector<16x128xf32>
    %76 = arith.addf %68, %75 : vector<16x128xf32>
    %c9 = arith.constant 9 : index
    %c0_58 = arith.constant 0 : index
    %c0_59 = arith.constant 0 : index
    %77 = vector.load %arg2[%c9, %c0_58, %c0_59] : memref<32x16x1xf32, #tpu.memory_space<vmem>>, vector<1x16x1xf32>
    %78 = vector.shape_cast %77 : vector<1x16x1xf32> to vector<16x1xf32>
    %c9_60 = arith.constant 9 : index
    %c0_61 = arith.constant 0 : index
    %c0_62 = arith.constant 0 : index
    %79 = vector.load %arg4[%c9_60, %c0_61, %c0_62] : memref<32x128x128xbf16, #tpu.memory_space<vmem>>, vector<1x128x128xbf16>
    %80 = vector.shape_cast %79 : vector<1x128x128xbf16> to vector<128x128xbf16>
    %cst_63 = arith.constant dense<0.000000e+00> : vector<16x128xf32>
    %81 = tpu.matmul %3, %80, %cst_63 {dimension_numbers = #tpu.dot_dimension_numbers<[1], [0], [0], [1], [0, 0, 1, 1], [], []>} : vector<16x128xbf16>, vector<128x128xbf16>, vector<16x128xf32> -> vector<16x128xf32>
    %82 = vector.broadcast %78 : vector<16x1xf32> to vector<16x128xf32>
    %83 = arith.mulf %82, %81 : vector<16x128xf32>
    %84 = arith.addf %76, %83 : vector<16x128xf32>
    %c10 = arith.constant 10 : index
    %c0_64 = arith.constant 0 : index
    %c0_65 = arith.constant 0 : index
    %85 = vector.load %arg2[%c10, %c0_64, %c0_65] : memref<32x16x1xf32, #tpu.memory_space<vmem>>, vector<1x16x1xf32>
    %86 = vector.shape_cast %85 : vector<1x16x1xf32> to vector<16x1xf32>
    %c10_66 = arith.constant 10 : index
    %c0_67 = arith.constant 0 : index
    %c0_68 = arith.constant 0 : index
    %87 = vector.load %arg4[%c10_66, %c0_67, %c0_68] : memref<32x128x128xbf16, #tpu.memory_space<vmem>>, vector<1x128x128xbf16>
    %88 = vector.shape_cast %87 : vector<1x128x128xbf16> to vector<128x128xbf16>
    %cst_69 = arith.constant dense<0.000000e+00> : vector<16x128xf32>
    %89 = tpu.matmul %3, %88, %cst_69 {dimension_numbers = #tpu.dot_dimension_numbers<[1], [0], [0], [1], [0, 0, 1, 1], [], []>} : vector<16x128xbf16>, vector<128x128xbf16>, vector<16x128xf32> -> vector<16x128xf32>
    %90 = vector.broadcast %86 : vector<16x1xf32> to vector<16x128xf32>
    %91 = arith.mulf %90, %89 : vector<16x128xf32>
    %92 = arith.addf %84, %91 : vector<16x128xf32>
    %c11 = arith.constant 11 : index
    %c0_70 = arith.constant 0 : index
    %c0_71 = arith.constant 0 : index
    %93 = vector.load %arg2[%c11, %c0_70, %c0_71] : memref<32x16x1xf32, #tpu.memory_space<vmem>>, vector<1x16x1xf32>
    %94 = vector.shape_cast %93 : vector<1x16x1xf32> to vector<16x1xf32>
    %c11_72 = arith.constant 11 : index
    %c0_73 = arith.constant 0 : index
    %c0_74 = arith.constant 0 : index
    %95 = vector.load %arg4[%c11_72, %c0_73, %c0_74] : memref<32x128x128xbf16, #tpu.memory_space<vmem>>, vector<1x128x128xbf16>
    %96 = vector.shape_cast %95 : vector<1x128x128xbf16> to vector<128x128xbf16>
    %cst_75 = arith.constant dense<0.000000e+00> : vector<16x128xf32>
    %97 = tpu.matmul %3, %96, %cst_75 {dimension_numbers = #tpu.dot_dimension_numbers<[1], [0], [0], [1], [0, 0, 1, 1], [], []>} : vector<16x128xbf16>, vector<128x128xbf16>, vector<16x128xf32> -> vector<16x128xf32>
    %98 = vector.broadcast %94 : vector<16x1xf32> to vector<16x128xf32>
    %99 = arith.mulf %98, %97 : vector<16x128xf32>
    %100 = arith.addf %92, %99 : vector<16x128xf32>
    %c12 = arith.constant 12 : index
    %c0_76 = arith.constant 0 : index
    %c0_77 = arith.constant 0 : index
    %101 = vector.load %arg2[%c12, %c0_76, %c0_77] : memref<32x16x1xf32, #tpu.memory_space<vmem>>, vector<1x16x1xf32>
    %102 = vector.shape_cast %101 : vector<1x16x1xf32> to vector<16x1xf32>
    %c12_78 = arith.constant 12 : index
    %c0_79 = arith.constant 0 : index
    %c0_80 = arith.constant 0 : index
    %103 = vector.load %arg4[%c12_78, %c0_79, %c0_80] : memref<32x128x128xbf16, #tpu.memory_space<vmem>>, vector<1x128x128xbf16>
    %104 = vector.shape_cast %103 : vector<1x128x128xbf16> to vector<128x128xbf16>
    %cst_81 = arith.constant dense<0.000000e+00> : vector<16x128xf32>
    %105 = tpu.matmul %3, %104, %cst_81 {dimension_numbers = #tpu.dot_dimension_numbers<[1], [0], [0], [1], [0, 0, 1, 1], [], []>} : vector<16x128xbf16>, vector<128x128xbf16>, vector<16x128xf32> -> vector<16x128xf32>
    %106 = vector.broadcast %102 : vector<16x1xf32> to vector<16x128xf32>
    %107 = arith.mulf %106, %105 : vector<16x128xf32>
    %108 = arith.addf %100, %107 : vector<16x128xf32>
    %c13 = arith.constant 13 : index
    %c0_82 = arith.constant 0 : index
    %c0_83 = arith.constant 0 : index
    %109 = vector.load %arg2[%c13, %c0_82, %c0_83] : memref<32x16x1xf32, #tpu.memory_space<vmem>>, vector<1x16x1xf32>
    %110 = vector.shape_cast %109 : vector<1x16x1xf32> to vector<16x1xf32>
    %c13_84 = arith.constant 13 : index
    %c0_85 = arith.constant 0 : index
    %c0_86 = arith.constant 0 : index
    %111 = vector.load %arg4[%c13_84, %c0_85, %c0_86] : memref<32x128x128xbf16, #tpu.memory_space<vmem>>, vector<1x128x128xbf16>
    %112 = vector.shape_cast %111 : vector<1x128x128xbf16> to vector<128x128xbf16>
    %cst_87 = arith.constant dense<0.000000e+00> : vector<16x128xf32>
    %113 = tpu.matmul %3, %112, %cst_87 {dimension_numbers = #tpu.dot_dimension_numbers<[1], [0], [0], [1], [0, 0, 1, 1], [], []>} : vector<16x128xbf16>, vector<128x128xbf16>, vector<16x128xf32> -> vector<16x128xf32>
    %114 = vector.broadcast %110 : vector<16x1xf32> to vector<16x128xf32>
    %115 = arith.mulf %114, %113 : vector<16x128xf32>
    %116 = arith.addf %108, %115 : vector<16x128xf32>
    %c14 = arith.constant 14 : index
    %c0_88 = arith.constant 0 : index
    %c0_89 = arith.constant 0 : index
    %117 = vector.load %arg2[%c14, %c0_88, %c0_89] : memref<32x16x1xf32, #tpu.memory_space<vmem>>, vector<1x16x1xf32>
    %118 = vector.shape_cast %117 : vector<1x16x1xf32> to vector<16x1xf32>
    %c14_90 = arith.constant 14 : index
    %c0_91 = arith.constant 0 : index
    %c0_92 = arith.constant 0 : index
    %119 = vector.load %arg4[%c14_90, %c0_91, %c0_92] : memref<32x128x128xbf16, #tpu.memory_space<vmem>>, vector<1x128x128xbf16>
    %120 = vector.shape_cast %119 : vector<1x128x128xbf16> to vector<128x128xbf16>
    %cst_93 = arith.constant dense<0.000000e+00> : vector<16x128xf32>
    %121 = tpu.matmul %3, %120, %cst_93 {dimension_numbers = #tpu.dot_dimension_numbers<[1], [0], [0], [1], [0, 0, 1, 1], [], []>} : vector<16x128xbf16>, vector<128x128xbf16>, vector<16x128xf32> -> vector<16x128xf32>
    %122 = vector.broadcast %118 : vector<16x1xf32> to vector<16x128xf32>
    %123 = arith.mulf %122, %121 : vector<16x128xf32>
    %124 = arith.addf %116, %123 : vector<16x128xf32>
    %c15 = arith.constant 15 : index
    %c0_94 = arith.constant 0 : index
    %c0_95 = arith.constant 0 : index
    %125 = vector.load %arg2[%c15, %c0_94, %c0_95] : memref<32x16x1xf32, #tpu.memory_space<vmem>>, vector<1x16x1xf32>
    %126 = vector.shape_cast %125 : vector<1x16x1xf32> to vector<16x1xf32>
    %c15_96 = arith.constant 15 : index
    %c0_97 = arith.constant 0 : index
    %c0_98 = arith.constant 0 : index
    %127 = vector.load %arg4[%c15_96, %c0_97, %c0_98] : memref<32x128x128xbf16, #tpu.memory_space<vmem>>, vector<1x128x128xbf16>
    %128 = vector.shape_cast %127 : vector<1x128x128xbf16> to vector<128x128xbf16>
    %cst_99 = arith.constant dense<0.000000e+00> : vector<16x128xf32>
    %129 = tpu.matmul %3, %128, %cst_99 {dimension_numbers = #tpu.dot_dimension_numbers<[1], [0], [0], [1], [0, 0, 1, 1], [], []>} : vector<16x128xbf16>, vector<128x128xbf16>, vector<16x128xf32> -> vector<16x128xf32>
    %130 = vector.broadcast %126 : vector<16x1xf32> to vector<16x128xf32>
    %131 = arith.mulf %130, %129 : vector<16x128xf32>
    %132 = arith.addf %124, %131 : vector<16x128xf32>
    %c16 = arith.constant 16 : index
    %c0_100 = arith.constant 0 : index
    %c0_101 = arith.constant 0 : index
    %133 = vector.load %arg2[%c16, %c0_100, %c0_101] : memref<32x16x1xf32, #tpu.memory_space<vmem>>, vector<1x16x1xf32>
    %134 = vector.shape_cast %133 : vector<1x16x1xf32> to vector<16x1xf32>
    %c16_102 = arith.constant 16 : index
    %c0_103 = arith.constant 0 : index
    %c0_104 = arith.constant 0 : index
    %135 = vector.load %arg4[%c16_102, %c0_103, %c0_104] : memref<32x128x128xbf16, #tpu.memory_space<vmem>>, vector<1x128x128xbf16>
    %136 = vector.shape_cast %135 : vector<1x128x128xbf16> to vector<128x128xbf16>
    %cst_105 = arith.constant dense<0.000000e+00> : vector<16x128xf32>
    %137 = tpu.matmul %3, %136, %cst_105 {dimension_numbers = #tpu.dot_dimension_numbers<[1], [0], [0], [1], [0, 0, 1, 1], [], []>} : vector<16x128xbf16>, vector<128x128xbf16>, vector<16x128xf32> -> vector<16x128xf32>
    %138 = vector.broadcast %134 : vector<16x1xf32> to vector<16x128xf32>
    %139 = arith.mulf %138, %137 : vector<16x128xf32>
    %140 = arith.addf %132, %139 : vector<16x128xf32>
    %c17 = arith.constant 17 : index
    %c0_106 = arith.constant 0 : index
    %c0_107 = arith.constant 0 : index
    %141 = vector.load %arg2[%c17, %c0_106, %c0_107] : memref<32x16x1xf32, #tpu.memory_space<vmem>>, vector<1x16x1xf32>
    %142 = vector.shape_cast %141 : vector<1x16x1xf32> to vector<16x1xf32>
    %c17_108 = arith.constant 17 : index
    %c0_109 = arith.constant 0 : index
    %c0_110 = arith.constant 0 : index
    %143 = vector.load %arg4[%c17_108, %c0_109, %c0_110] : memref<32x128x128xbf16, #tpu.memory_space<vmem>>, vector<1x128x128xbf16>
    %144 = vector.shape_cast %143 : vector<1x128x128xbf16> to vector<128x128xbf16>
    %cst_111 = arith.constant dense<0.000000e+00> : vector<16x128xf32>
    %145 = tpu.matmul %3, %144, %cst_111 {dimension_numbers = #tpu.dot_dimension_numbers<[1], [0], [0], [1], [0, 0, 1, 1], [], []>} : vector<16x128xbf16>, vector<128x128xbf16>, vector<16x128xf32> -> vector<16x128xf32>
    %146 = vector.broadcast %142 : vector<16x1xf32> to vector<16x128xf32>
    %147 = arith.mulf %146, %145 : vector<16x128xf32>
    %148 = arith.addf %140, %147 : vector<16x128xf32>
    %c18 = arith.constant 18 : index
    %c0_112 = arith.constant 0 : index
    %c0_113 = arith.constant 0 : index
    %149 = vector.load %arg2[%c18, %c0_112, %c0_113] : memref<32x16x1xf32, #tpu.memory_space<vmem>>, vector<1x16x1xf32>
    %150 = vector.shape_cast %149 : vector<1x16x1xf32> to vector<16x1xf32>
    %c18_114 = arith.constant 18 : index
    %c0_115 = arith.constant 0 : index
    %c0_116 = arith.constant 0 : index
    %151 = vector.load %arg4[%c18_114, %c0_115, %c0_116] : memref<32x128x128xbf16, #tpu.memory_space<vmem>>, vector<1x128x128xbf16>
    %152 = vector.shape_cast %151 : vector<1x128x128xbf16> to vector<128x128xbf16>
    %cst_117 = arith.constant dense<0.000000e+00> : vector<16x128xf32>
    %153 = tpu.matmul %3, %152, %cst_117 {dimension_numbers = #tpu.dot_dimension_numbers<[1], [0], [0], [1], [0, 0, 1, 1], [], []>} : vector<16x128xbf16>, vector<128x128xbf16>, vector<16x128xf32> -> vector<16x128xf32>
    %154 = vector.broadcast %150 : vector<16x1xf32> to vector<16x128xf32>
    %155 = arith.mulf %154, %153 : vector<16x128xf32>
    %156 = arith.addf %148, %155 : vector<16x128xf32>
    %c19 = arith.constant 19 : index
    %c0_118 = arith.constant 0 : index
    %c0_119 = arith.constant 0 : index
    %157 = vector.load %arg2[%c19, %c0_118, %c0_119] : memref<32x16x1xf32, #tpu.memory_space<vmem>>, vector<1x16x1xf32>
    %158 = vector.shape_cast %157 : vector<1x16x1xf32> to vector<16x1xf32>
    %c19_120 = arith.constant 19 : index
    %c0_121 = arith.constant 0 : index
    %c0_122 = arith.constant 0 : index
    %159 = vector.load %arg4[%c19_120, %c0_121, %c0_122] : memref<32x128x128xbf16, #tpu.memory_space<vmem>>, vector<1x128x128xbf16>
    %160 = vector.shape_cast %159 : vector<1x128x128xbf16> to vector<128x128xbf16>
    %cst_123 = arith.constant dense<0.000000e+00> : vector<16x128xf32>
    %161 = tpu.matmul %3, %160, %cst_123 {dimension_numbers = #tpu.dot_dimension_numbers<[1], [0], [0], [1], [0, 0, 1, 1], [], []>} : vector<16x128xbf16>, vector<128x128xbf16>, vector<16x128xf32> -> vector<16x128xf32>
    %162 = vector.broadcast %158 : vector<16x1xf32> to vector<16x128xf32>
    %163 = arith.mulf %162, %161 : vector<16x128xf32>
    %164 = arith.addf %156, %163 : vector<16x128xf32>
    %c20 = arith.constant 20 : index
    %c0_124 = arith.constant 0 : index
    %c0_125 = arith.constant 0 : index
    %165 = vector.load %arg2[%c20, %c0_124, %c0_125] : memref<32x16x1xf32, #tpu.memory_space<vmem>>, vector<1x16x1xf32>
    %166 = vector.shape_cast %165 : vector<1x16x1xf32> to vector<16x1xf32>
    %c20_126 = arith.constant 20 : index
    %c0_127 = arith.constant 0 : index
    %c0_128 = arith.constant 0 : index
    %167 = vector.load %arg4[%c20_126, %c0_127, %c0_128] : memref<32x128x128xbf16, #tpu.memory_space<vmem>>, vector<1x128x128xbf16>
    %168 = vector.shape_cast %167 : vector<1x128x128xbf16> to vector<128x128xbf16>
    %cst_129 = arith.constant dense<0.000000e+00> : vector<16x128xf32>
    %169 = tpu.matmul %3, %168, %cst_129 {dimension_numbers = #tpu.dot_dimension_numbers<[1], [0], [0], [1], [0, 0, 1, 1], [], []>} : vector<16x128xbf16>, vector<128x128xbf16>, vector<16x128xf32> -> vector<16x128xf32>
    %170 = vector.broadcast %166 : vector<16x1xf32> to vector<16x128xf32>
    %171 = arith.mulf %170, %169 : vector<16x128xf32>
    %172 = arith.addf %164, %171 : vector<16x128xf32>
    %c21 = arith.constant 21 : index
    %c0_130 = arith.constant 0 : index
    %c0_131 = arith.constant 0 : index
    %173 = vector.load %arg2[%c21, %c0_130, %c0_131] : memref<32x16x1xf32, #tpu.memory_space<vmem>>, vector<1x16x1xf32>
    %174 = vector.shape_cast %173 : vector<1x16x1xf32> to vector<16x1xf32>
    %c21_132 = arith.constant 21 : index
    %c0_133 = arith.constant 0 : index
    %c0_134 = arith.constant 0 : index
    %175 = vector.load %arg4[%c21_132, %c0_133, %c0_134] : memref<32x128x128xbf16, #tpu.memory_space<vmem>>, vector<1x128x128xbf16>
    %176 = vector.shape_cast %175 : vector<1x128x128xbf16> to vector<128x128xbf16>
    %cst_135 = arith.constant dense<0.000000e+00> : vector<16x128xf32>
    %177 = tpu.matmul %3, %176, %cst_135 {dimension_numbers = #tpu.dot_dimension_numbers<[1], [0], [0], [1], [0, 0, 1, 1], [], []>} : vector<16x128xbf16>, vector<128x128xbf16>, vector<16x128xf32> -> vector<16x128xf32>
    %178 = vector.broadcast %174 : vector<16x1xf32> to vector<16x128xf32>
    %179 = arith.mulf %178, %177 : vector<16x128xf32>
    %180 = arith.addf %172, %179 : vector<16x128xf32>
    %c22 = arith.constant 22 : index
    %c0_136 = arith.constant 0 : index
    %c0_137 = arith.constant 0 : index
    %181 = vector.load %arg2[%c22, %c0_136, %c0_137] : memref<32x16x1xf32, #tpu.memory_space<vmem>>, vector<1x16x1xf32>
    %182 = vector.shape_cast %181 : vector<1x16x1xf32> to vector<16x1xf32>
    %c22_138 = arith.constant 22 : index
    %c0_139 = arith.constant 0 : index
    %c0_140 = arith.constant 0 : index
    %183 = vector.load %arg4[%c22_138, %c0_139, %c0_140] : memref<32x128x128xbf16, #tpu.memory_space<vmem>>, vector<1x128x128xbf16>
    %184 = vector.shape_cast %183 : vector<1x128x128xbf16> to vector<128x128xbf16>
    %cst_141 = arith.constant dense<0.000000e+00> : vector<16x128xf32>
    %185 = tpu.matmul %3, %184, %cst_141 {dimension_numbers = #tpu.dot_dimension_numbers<[1], [0], [0], [1], [0, 0, 1, 1], [], []>} : vector<16x128xbf16>, vector<128x128xbf16>, vector<16x128xf32> -> vector<16x128xf32>
    %186 = vector.broadcast %182 : vector<16x1xf32> to vector<16x128xf32>
    %187 = arith.mulf %186, %185 : vector<16x128xf32>
    %188 = arith.addf %180, %187 : vector<16x128xf32>
    %c23 = arith.constant 23 : index
    %c0_142 = arith.constant 0 : index
    %c0_143 = arith.constant 0 : index
    %189 = vector.load %arg2[%c23, %c0_142, %c0_143] : memref<32x16x1xf32, #tpu.memory_space<vmem>>, vector<1x16x1xf32>
    %190 = vector.shape_cast %189 : vector<1x16x1xf32> to vector<16x1xf32>
    %c23_144 = arith.constant 23 : index
    %c0_145 = arith.constant 0 : index
    %c0_146 = arith.constant 0 : index
    %191 = vector.load %arg4[%c23_144, %c0_145, %c0_146] : memref<32x128x128xbf16, #tpu.memory_space<vmem>>, vector<1x128x128xbf16>
    %192 = vector.shape_cast %191 : vector<1x128x128xbf16> to vector<128x128xbf16>
    %cst_147 = arith.constant dense<0.000000e+00> : vector<16x128xf32>
    %193 = tpu.matmul %3, %192, %cst_147 {dimension_numbers = #tpu.dot_dimension_numbers<[1], [0], [0], [1], [0, 0, 1, 1], [], []>} : vector<16x128xbf16>, vector<128x128xbf16>, vector<16x128xf32> -> vector<16x128xf32>
    %194 = vector.broadcast %190 : vector<16x1xf32> to vector<16x128xf32>
    %195 = arith.mulf %194, %193 : vector<16x128xf32>
    %196 = arith.addf %188, %195 : vector<16x128xf32>
    %c24 = arith.constant 24 : index
    %c0_148 = arith.constant 0 : index
    %c0_149 = arith.constant 0 : index
    %197 = vector.load %arg2[%c24, %c0_148, %c0_149] : memref<32x16x1xf32, #tpu.memory_space<vmem>>, vector<1x16x1xf32>
    %198 = vector.shape_cast %197 : vector<1x16x1xf32> to vector<16x1xf32>
    %c24_150 = arith.constant 24 : index
    %c0_151 = arith.constant 0 : index
    %c0_152 = arith.constant 0 : index
    %199 = vector.load %arg4[%c24_150, %c0_151, %c0_152] : memref<32x128x128xbf16, #tpu.memory_space<vmem>>, vector<1x128x128xbf16>
    %200 = vector.shape_cast %199 : vector<1x128x128xbf16> to vector<128x128xbf16>
    %cst_153 = arith.constant dense<0.000000e+00> : vector<16x128xf32>
    %201 = tpu.matmul %3, %200, %cst_153 {dimension_numbers = #tpu.dot_dimension_numbers<[1], [0], [0], [1], [0, 0, 1, 1], [], []>} : vector<16x128xbf16>, vector<128x128xbf16>, vector<16x128xf32> -> vector<16x128xf32>
    %202 = vector.broadcast %198 : vector<16x1xf32> to vector<16x128xf32>
    %203 = arith.mulf %202, %201 : vector<16x128xf32>
    %204 = arith.addf %196, %203 : vector<16x128xf32>
    %c25 = arith.constant 25 : index
    %c0_154 = arith.constant 0 : index
    %c0_155 = arith.constant 0 : index
    %205 = vector.load %arg2[%c25, %c0_154, %c0_155] : memref<32x16x1xf32, #tpu.memory_space<vmem>>, vector<1x16x1xf32>
    %206 = vector.shape_cast %205 : vector<1x16x1xf32> to vector<16x1xf32>
    %c25_156 = arith.constant 25 : index
    %c0_157 = arith.constant 0 : index
    %c0_158 = arith.constant 0 : index
    %207 = vector.load %arg4[%c25_156, %c0_157, %c0_158] : memref<32x128x128xbf16, #tpu.memory_space<vmem>>, vector<1x128x128xbf16>
    %208 = vector.shape_cast %207 : vector<1x128x128xbf16> to vector<128x128xbf16>
    %cst_159 = arith.constant dense<0.000000e+00> : vector<16x128xf32>
    %209 = tpu.matmul %3, %208, %cst_159 {dimension_numbers = #tpu.dot_dimension_numbers<[1], [0], [0], [1], [0, 0, 1, 1], [], []>} : vector<16x128xbf16>, vector<128x128xbf16>, vector<16x128xf32> -> vector<16x128xf32>
    %210 = vector.broadcast %206 : vector<16x1xf32> to vector<16x128xf32>
    %211 = arith.mulf %210, %209 : vector<16x128xf32>
    %212 = arith.addf %204, %211 : vector<16x128xf32>
    %c26 = arith.constant 26 : index
    %c0_160 = arith.constant 0 : index
    %c0_161 = arith.constant 0 : index
    %213 = vector.load %arg2[%c26, %c0_160, %c0_161] : memref<32x16x1xf32, #tpu.memory_space<vmem>>, vector<1x16x1xf32>
    %214 = vector.shape_cast %213 : vector<1x16x1xf32> to vector<16x1xf32>
    %c26_162 = arith.constant 26 : index
    %c0_163 = arith.constant 0 : index
    %c0_164 = arith.constant 0 : index
    %215 = vector.load %arg4[%c26_162, %c0_163, %c0_164] : memref<32x128x128xbf16, #tpu.memory_space<vmem>>, vector<1x128x128xbf16>
    %216 = vector.shape_cast %215 : vector<1x128x128xbf16> to vector<128x128xbf16>
    %cst_165 = arith.constant dense<0.000000e+00> : vector<16x128xf32>
    %217 = tpu.matmul %3, %216, %cst_165 {dimension_numbers = #tpu.dot_dimension_numbers<[1], [0], [0], [1], [0, 0, 1, 1], [], []>} : vector<16x128xbf16>, vector<128x128xbf16>, vector<16x128xf32> -> vector<16x128xf32>
    %218 = vector.broadcast %214 : vector<16x1xf32> to vector<16x128xf32>
    %219 = arith.mulf %218, %217 : vector<16x128xf32>
    %220 = arith.addf %212, %219 : vector<16x128xf32>
    %c27 = arith.constant 27 : index
    %c0_166 = arith.constant 0 : index
    %c0_167 = arith.constant 0 : index
    %221 = vector.load %arg2[%c27, %c0_166, %c0_167] : memref<32x16x1xf32, #tpu.memory_space<vmem>>, vector<1x16x1xf32>
    %222 = vector.shape_cast %221 : vector<1x16x1xf32> to vector<16x1xf32>
    %c27_168 = arith.constant 27 : index
    %c0_169 = arith.constant 0 : index
    %c0_170 = arith.constant 0 : index
    %223 = vector.load %arg4[%c27_168, %c0_169, %c0_170] : memref<32x128x128xbf16, #tpu.memory_space<vmem>>, vector<1x128x128xbf16>
    %224 = vector.shape_cast %223 : vector<1x128x128xbf16> to vector<128x128xbf16>
    %cst_171 = arith.constant dense<0.000000e+00> : vector<16x128xf32>
    %225 = tpu.matmul %3, %224, %cst_171 {dimension_numbers = #tpu.dot_dimension_numbers<[1], [0], [0], [1], [0, 0, 1, 1], [], []>} : vector<16x128xbf16>, vector<128x128xbf16>, vector<16x128xf32> -> vector<16x128xf32>
    %226 = vector.broadcast %222 : vector<16x1xf32> to vector<16x128xf32>
    %227 = arith.mulf %226, %225 : vector<16x128xf32>
    %228 = arith.addf %220, %227 : vector<16x128xf32>
    %c28 = arith.constant 28 : index
    %c0_172 = arith.constant 0 : index
    %c0_173 = arith.constant 0 : index
    %229 = vector.load %arg2[%c28, %c0_172, %c0_173] : memref<32x16x1xf32, #tpu.memory_space<vmem>>, vector<1x16x1xf32>
    %230 = vector.shape_cast %229 : vector<1x16x1xf32> to vector<16x1xf32>
    %c28_174 = arith.constant 28 : index
    %c0_175 = arith.constant 0 : index
    %c0_176 = arith.constant 0 : index
    %231 = vector.load %arg4[%c28_174, %c0_175, %c0_176] : memref<32x128x128xbf16, #tpu.memory_space<vmem>>, vector<1x128x128xbf16>
    %232 = vector.shape_cast %231 : vector<1x128x128xbf16> to vector<128x128xbf16>
    %cst_177 = arith.constant dense<0.000000e+00> : vector<16x128xf32>
    %233 = tpu.matmul %3, %232, %cst_177 {dimension_numbers = #tpu.dot_dimension_numbers<[1], [0], [0], [1], [0, 0, 1, 1], [], []>} : vector<16x128xbf16>, vector<128x128xbf16>, vector<16x128xf32> -> vector<16x128xf32>
    %234 = vector.broadcast %230 : vector<16x1xf32> to vector<16x128xf32>
    %235 = arith.mulf %234, %233 : vector<16x128xf32>
    %236 = arith.addf %228, %235 : vector<16x128xf32>
    %c29 = arith.constant 29 : index
    %c0_178 = arith.constant 0 : index
    %c0_179 = arith.constant 0 : index
    %237 = vector.load %arg2[%c29, %c0_178, %c0_179] : memref<32x16x1xf32, #tpu.memory_space<vmem>>, vector<1x16x1xf32>
    %238 = vector.shape_cast %237 : vector<1x16x1xf32> to vector<16x1xf32>
    %c29_180 = arith.constant 29 : index
    %c0_181 = arith.constant 0 : index
    %c0_182 = arith.constant 0 : index
    %239 = vector.load %arg4[%c29_180, %c0_181, %c0_182] : memref<32x128x128xbf16, #tpu.memory_space<vmem>>, vector<1x128x128xbf16>
    %240 = vector.shape_cast %239 : vector<1x128x128xbf16> to vector<128x128xbf16>
    %cst_183 = arith.constant dense<0.000000e+00> : vector<16x128xf32>
    %241 = tpu.matmul %3, %240, %cst_183 {dimension_numbers = #tpu.dot_dimension_numbers<[1], [0], [0], [1], [0, 0, 1, 1], [], []>} : vector<16x128xbf16>, vector<128x128xbf16>, vector<16x128xf32> -> vector<16x128xf32>
    %242 = vector.broadcast %238 : vector<16x1xf32> to vector<16x128xf32>
    %243 = arith.mulf %242, %241 : vector<16x128xf32>
    %244 = arith.addf %236, %243 : vector<16x128xf32>
    %c30 = arith.constant 30 : index
    %c0_184 = arith.constant 0 : index
    %c0_185 = arith.constant 0 : index
    %245 = vector.load %arg2[%c30, %c0_184, %c0_185] : memref<32x16x1xf32, #tpu.memory_space<vmem>>, vector<1x16x1xf32>
    %246 = vector.shape_cast %245 : vector<1x16x1xf32> to vector<16x1xf32>
    %c30_186 = arith.constant 30 : index
    %c0_187 = arith.constant 0 : index
    %c0_188 = arith.constant 0 : index
    %247 = vector.load %arg4[%c30_186, %c0_187, %c0_188] : memref<32x128x128xbf16, #tpu.memory_space<vmem>>, vector<1x128x128xbf16>
    %248 = vector.shape_cast %247 : vector<1x128x128xbf16> to vector<128x128xbf16>
    %cst_189 = arith.constant dense<0.000000e+00> : vector<16x128xf32>
    %249 = tpu.matmul %3, %248, %cst_189 {dimension_numbers = #tpu.dot_dimension_numbers<[1], [0], [0], [1], [0, 0, 1, 1], [], []>} : vector<16x128xbf16>, vector<128x128xbf16>, vector<16x128xf32> -> vector<16x128xf32>
    %250 = vector.broadcast %246 : vector<16x1xf32> to vector<16x128xf32>
    %251 = arith.mulf %250, %249 : vector<16x128xf32>
    %252 = arith.addf %244, %251 : vector<16x128xf32>
    %c31 = arith.constant 31 : index
    %c0_190 = arith.constant 0 : index
    %c0_191 = arith.constant 0 : index
    %253 = vector.load %arg2[%c31, %c0_190, %c0_191] : memref<32x16x1xf32, #tpu.memory_space<vmem>>, vector<1x16x1xf32>
    %254 = vector.shape_cast %253 : vector<1x16x1xf32> to vector<16x1xf32>
    %c31_192 = arith.constant 31 : index
    %c0_193 = arith.constant 0 : index
    %c0_194 = arith.constant 0 : index
    %255 = vector.load %arg4[%c31_192, %c0_193, %c0_194] : memref<32x128x128xbf16, #tpu.memory_space<vmem>>, vector<1x128x128xbf16>
    %256 = vector.shape_cast %255 : vector<1x128x128xbf16> to vector<128x128xbf16>
    %cst_195 = arith.constant dense<0.000000e+00> : vector<16x128xf32>
    %257 = tpu.matmul %3, %256, %cst_195 {dimension_numbers = #tpu.dot_dimension_numbers<[1], [0], [0], [1], [0, 0, 1, 1], [], []>} : vector<16x128xbf16>, vector<128x128xbf16>, vector<16x128xf32> -> vector<16x128xf32>
    %258 = vector.broadcast %254 : vector<16x1xf32> to vector<16x128xf32>
    %259 = arith.mulf %258, %257 : vector<16x128xf32>
    %260 = arith.addf %252, %259 : vector<16x128xf32>
    %c0_196 = arith.constant 0 : index
    %c0_197 = arith.constant 0 : index
    %261 = vector.load %arg6[%c0_196, %c0_197] : memref<16x128xf32, #tpu.memory_space<vmem>>, vector<16x128xf32>
    tpu.vector_store %arg6[%c0_196, %c0_197], %260 {strides = array<i32>} : memref<16x128xf32, #tpu.memory_space<vmem>>, vector<16x128xf32>,
    %c0_i32_198 = arith.constant 0 : i32
    %262 = arith.cmpi eq, %arg1, %c0_i32_198 : i32
    %263 = arith.extui %262 : i1 to i32
    %c0_i32_199 = arith.constant 0 : i32
    %264 = arith.cmpi ne, %263, %c0_i32_199 : i32
    scf.if %264 {
      %c0_200 = arith.constant 0 : index
      %c0_201 = arith.constant 0 : index
      %265 = vector.load %arg6[%c0_200, %c0_201] : memref<16x128xf32, #tpu.memory_space<vmem>>, vector<16x128xf32>
      %266 = arith.truncf %265 : vector<16x128xf32> to vector<16x128xbf16>
      %c0_202 = arith.constant 0 : index
      %c0_203 = arith.constant 0 : index
      %267 = vector.load %arg5[%c0_202, %c0_203] : memref<16x128xbf16, #tpu.memory_space<vmem>>, vector<16x128xbf16>
      tpu.vector_store %arg5[%c0_202, %c0_203], %266 {strides = array<i32>} : memref<16x128xbf16, #tpu.memory_space<vmem>>, vector<16x128xbf16>,
    } else {
    }
    return
  }
  func.func @transform_0(%arg0: i32, %arg1: i32) -> (i32, i32, i32) {
    %c0_i32 = arith.constant 0 : i32
    %c0_i32_0 = arith.constant 0 : i32
    return %arg1, %arg0, %c0_i32 : i32, i32, i32
  }
  func.func @transform_1(%arg0: i32, %arg1: i32) -> (i32, i32) {
    %c0_i32 = arith.constant 0 : i32
    %c0_i32_0 = arith.constant 0 : i32
    return %arg0, %c0_i32 : i32, i32
  }
  func.func @transform_2(%arg0: i32, %arg1: i32) -> (i32, i32, i32) {
    %c0_i32 = arith.constant 0 : i32
    %c0_i32_0 = arith.constant 0 : i32
    %c0_i32_1 = arith.constant 0 : i32
    return %arg1, %c0_i32, %c0_i32_0 : i32, i32, i32
  }
  func.func @transform_3(%arg0: i32, %arg1: i32) -> (i32, i32) {
    %c0_i32 = arith.constant 0 : i32
    %c0_i32_0 = arith.constant 0 : i32
    return %arg0, %c0_i32 : i32, i32
  }
}

</mosaic_0001>

<bundles_post_ra>
// kernel: tpu_custom_call.1
= control target key start
LH: loop header
LB: loop body
LE: loop exit
PB: predicated region body
PF: predicated region fallthrough
CT: control target
= control target key end

     0   :  { %8 = vsyncpa [#allocation4], 0  ;;  %s4867_s0 = inlined_call_operand.vmem [shape: f32[32,16,1], index: 0, kind: input, shape index: {}]   ;;  %s4868_s1 = inlined_call_operand.vmem [shape: bf16[16,128], index: 1, kind: input, shape index: {}]   ;;  %s4869_s2 = inlined_call_operand.hbm [shape: bf16[32,128,128], index: 2, kind: input, shape index: {}]   ;;  %s4870_s3 = inlined_call_operand.hbm [shape: bf16[16,128], index: 3, kind: output, shape index: {}]  }
   0x1   :  { %9 = vsyncpa [#allocation5], 0  ;;  %s18_s14 = sshll.u32 %s4869_s2, 4  ;;  %s4560_s15 = smov [#allocation3]   ;;  %s19_s14 = int_to_ptr.hbm [resolvable:$true] %s18_s14 }
   0x2   :  { %s20_s16 = sshll.u32 %s4560_s15, 4  ;;  %s4561_s17 = smov 64   ;;  %s21_s16 = int_to_ptr.vmem [resolvable:$true] %s20_s16 }
   0x3   :  { %s4562_s18 = smov 4  }
   0x4   :  { %26 = dma.hbm_to_vmem [thread:$0]  %s19_s14, 32768, %s21_s16, [#allocation4], %s4561_s17, %s4561_s17, %s4562_s18  }
   0x5   :  { %4556 = dma.done.wait [#allocation4], 32768  }
   0x6   :  { %4557 = vsyncadd [#allocation4], 4294934528  ;;  %v4563_v0 = vmov 0   ;;  %v3217_v1 = vld [vmem:[%s4867_s0 + $0x20] sm:$0xff]  ;;  %v3183_v2 = vld [vmem:[%s4867_s0 + $0x10] sm:$0xff]  ;;  %s3134_s22 = sshll.u32 %s4870_s3, 4  ;;  %s3135_s22 = int_to_ptr.hbm [resolvable:$true] %s3134_s22 }
   0x7   :  { %4506 = vset.pattern.permute.xlu2 %v4563_v0  ;;  %4505 = vset.pattern.permute.xlu1 %v4563_v0  ;;  %v41_v3 = vld [vmem:[%s4867_s0] sm:$0xff]  ;;  %v4245_v4 = vld [vmem:[#allocation3 + $0x38] sm:$0xff]  ;;  %v4244_v8 = vld [vmem:[#allocation3 + $0x30] sm:$0xff] }
   0x8   :  { %4504 = vset.pattern.permute.xlu0 %v4563_v0  ;;  %321 = vperm.xlu2 %4506, %v3217_v1   ;;  %v4253_v5 = vld [vmem:[#allocation3 + $0x78] sm:$0xff]  ;;  %v4252_v9 = vld [vmem:[#allocation3 + $0x70] sm:$0xff]  ;;  %v3218_v12 = vld [vmem:[%s4867_s0 + $0x28] sm:$0xff] }
   0x9   :  { %225 = vperm.xlu1 %4505, %v3183_v2   ;;  %v4261_v6 = vld [vmem:[#allocation3 + $0xb8] sm:$0xff]  ;;  %129 = vperm.xlu0 %4504, %v41_v3   ;;  %v4260_v10 = vld [vmem:[#allocation3 + $0xb0] sm:$0xff]  ;;  %v42_v14 = vld [vmem:[%s4867_s0 + $0x8] sm:$0xff] }
   0xa   :  { %v4269_v7 = vld [vmem:[#allocation3 + $0xf8] sm:$0xff]  ;;  %113 = vmatpush.bf16.msra.mxu0 %v4245_v4  ;;  %209 = vmatpush.bf16.msra.mxu1 %v4253_v5  ;;  %v4268_v11 = vld [vmem:[#allocation3 + $0xf0] sm:$0xff]  ;;  %v4243_v15 = vld [vmem:[#allocation3 + $0x28] sm:$0xff] }
   0xb   :  { %305 = vmatpush.bf16.msra.mxu2 %v4261_v6  ;;  %401 = vmatpush.bf16.msra.mxu3 %v4269_v7  ;;  %v3184_v13 = vld [vmem:[%s4867_s0 + $0x18] sm:$0xff]  ;;  %v4251_v16 = vld [vmem:[#allocation3 + $0x68] sm:$0xff]  ;;  %v4242_v19 = vld [vmem:[#allocation3 + $0x20] sm:$0xff] }
   0xc   :  { %v4259_v17 = vld [vmem:[#allocation3 + $0xa8] sm:$0xff]  ;;  %v4250_v20 = vld [vmem:[#allocation3 + $0x60] sm:$0xff]  ;;  %v3252_v24 = vld [vmem:[%s4867_s0 + $0x38] sm:$0xff] }
   0xd   :  { %v4267_v18 = vld [vmem:[#allocation3 + $0xe8] sm:$0xff]  ;;  %v4258_v21 = vld [vmem:[#allocation3 + $0xa0] sm:$0xff]  ;;  %v3251_v25 = vld [vmem:[%s4867_s0 + $0x30] sm:$0xff] }
   0xe   :  { %114 = vmatpush.bf16.msra.mxu0 %v4244_v8  ;;  %210 = vmatpush.bf16.msra.mxu1 %v4252_v9  ;;  %v4266_v22 = vld [vmem:[#allocation3 + $0xe0] sm:$0xff]  ;;  %v4241_v26 = vld [vmem:[#allocation3 + $0x18] sm:$0xff]  ;;  %v4240_v30 = vld [vmem:[#allocation3 + $0x10] sm:$0xff] }
   0xf   :  { %306 = vmatpush.bf16.msra.mxu2 %v4260_v10  ;;  %402 = vmatpush.bf16.msra.mxu3 %v4268_v11  ;;  %v3285_v23 = vld [vmem:[%s4867_s0 + $0x40] sm:$0xff]  ;;  %v4249_v27 = vld [vmem:[#allocation3 + $0x58] sm:$0xff]  ;;  %v4248_v31 = vld [vmem:[#allocation3 + $0x50] sm:$0xff] }
  0x10   :  { %326 = vperm.xlu2 %4506, %v3218_v12   ;;  %v4257_v28 = vld [vmem:[#allocation3 + $0x98] sm:$0xff]  ;;  %v4256_v32 = vld [vmem:[#allocation3 + $0x90] sm:$0xff]  ;;  %v3286_v36 = vld [vmem:[%s4867_s0 + $0x48] sm:$0xff] }
  0x11   :  { %230 = vperm.xlu1 %4505, %v3184_v13   ;;  %134 = vperm.xlu0 %4504, %v42_v14   ;;  %v4265_v29 = vld [vmem:[#allocation3 + $0xd8] sm:$0xff]  ;;  %v4264_v33 = vld [vmem:[#allocation3 + $0xd0] sm:$0xff]  ;;  %v4239_v37 = vld [vmem:[#allocation3 + $0x8] sm:$0xff] }
  0x12   :  { %115 = vmatpush.bf16.msra.mxu0 %v4243_v15  ;;  %211 = vmatpush.bf16.msra.mxu1 %v4251_v16  ;;  %v3320_v34 = vld [vmem:[%s4867_s0 + $0x58] sm:$0xff]  ;;  %v3319_v35 = vld [vmem:[%s4867_s0 + $0x50] sm:$0xff]  ;;  %v4247_v38 = vld [vmem:[#allocation3 + $0x48] sm:$0xff] }
  0x13   :  { %307 = vmatpush.bf16.msra.mxu2 %v4259_v17  ;;  %403 = vmatpush.bf16.msra.mxu3 %v4267_v18  ;;  %v4255_v39 = vld [vmem:[#allocation3 + $0x88] sm:$0xff]  ;;  %v4238_v41 = vld [vmem:[#allocation3] sm:$0xff]  ;;  %v4277_v45 = vld [vmem:[#allocation3 + $0x138] sm:$0xff] }
  0x14   :  { %v4263_v40 = vld [vmem:[#allocation3 + $0xc8] sm:$0xff]  ;;  %v4246_v42 = vld [vmem:[#allocation3 + $0x40] sm:$0xff]  ;;  %v4285_v46 = vld [vmem:[#allocation3 + $0x178] sm:$0xff] }
  0x15   :  { %v4254_v43 = vld [vmem:[#allocation3 + $0x80] sm:$0xff]  ;;  %v4293_v47 = vld [vmem:[#allocation3 + $0x1b8] sm:$0xff]  ;;  %v3387_v49 = vld [vmem:[%s4867_s0 + $0x70] sm:$0xff] }
  0x16   :  { %116 = vmatpush.bf16.msra.mxu0 %v4242_v19  ;;  %212 = vmatpush.bf16.msra.mxu1 %v4250_v20  ;;  %v4262_v44 = vld [vmem:[#allocation3 + $0xc0] sm:$0xff]  ;;  %v4301_v48 = vld [vmem:[#allocation3 + $0x1f8] sm:$0xff]  ;;  %v3354_v50 = vld [vmem:[%s4867_s0 + $0x68] sm:$0xff] }
  0x17   :  { %308 = vmatpush.bf16.msra.mxu2 %v4258_v21  ;;  %404 = vmatpush.bf16.msra.mxu3 %v4266_v22  ;;  %v4636_v51 = vld [vmem:[%s4868_s1] sm:$0xff]  ;;  %v4276_v53 = vld [vmem:[#allocation3 + $0x130] sm:$0xff]  ;;  %v4275_v57 = vld [vmem:[#allocation3 + $0x128] sm:$0xff] }
  0x18   :  { %513 = vperm.xlu2 %4506, %v3285_v23   ;;  %v3353_v52 = vld [vmem:[%s4867_s0 + $0x60] sm:$0xff]  ;;  %v4284_v54 = vld [vmem:[#allocation3 + $0x170] sm:$0xff]  ;;  %v4283_v58 = vld [vmem:[#allocation3 + $0x168] sm:$0xff] }
  0x19   :  { %422 = vperm.xlu1 %4505, %v3252_v24   ;;  %417 = vperm.xlu0 %4504, %v3251_v25   ;;  %v4292_v55 = vld [vmem:[#allocation3 + $0x1b0] sm:$0xff]  ;;  %v4291_v59 = vld [vmem:[#allocation3 + $0x1a8] sm:$0xff]  ;;  %v3421_v62 = vld [vmem:[%s4867_s0 + $0x80] sm:$0xff] }
  0x1a   :  { %117 = vmatpush.bf16.msra.mxu0 %v4241_v26  ;;  %213 = vmatpush.bf16.msra.mxu1 %v4249_v27  ;;  %v4300_v56 = vld [vmem:[#allocation3 + $0x1f0] sm:$0xff]  ;;  %v4299_v60 = vld [vmem:[#allocation3 + $0x1e8] sm:$0xff]  ;;  %v3388_v63 = vld [vmem:[%s4867_s0 + $0x78] sm:$0xff] }
  0x1b   :  { %309 = vmatpush.bf16.msra.mxu2 %v4257_v28  ;;  %405 = vmatpush.bf16.msra.mxu3 %v4265_v29  ;;  %v3422_v61 = vld [vmem:[%s4867_s0 + $0x88] sm:$0xff]  ;;  %v4274_v0 = vld [vmem:[#allocation3 + $0x120] sm:$0xff]  ;;  %v4273_v4 = vld [vmem:[#allocation3 + $0x118] sm:$0xff] }
  0x1c   :  { %v4282_v1 = vld [vmem:[#allocation3 + $0x160] sm:$0xff]  ;;  %v4281_v5 = vld [vmem:[#allocation3 + $0x158] sm:$0xff]  ;;  %v3455_v10 = vld [vmem:[%s4867_s0 + $0x90] sm:$0xff] }
  0x1d   :  { %v4290_v2 = vld [vmem:[#allocation3 + $0x1a0] sm:$0xff]  ;;  %v4289_v6 = vld [vmem:[#allocation3 + $0x198] sm:$0xff]  ;;  %v4272_v11 = vld [vmem:[#allocation3 + $0x110] sm:$0xff] }
  0x1e   :  { %118 = vmatpush.bf16.msra.mxu0 %v4240_v30  ;;  %214 = vmatpush.bf16.msra.mxu1 %v4248_v31  ;;  %v4298_v3 = vld [vmem:[#allocation3 + $0x1e0] sm:$0xff]  ;;  %v4297_v7 = vld [vmem:[#allocation3 + $0x1d8] sm:$0xff]  ;;  %v4280_v12 = vld [vmem:[#allocation3 + $0x150] sm:$0xff] }
  0x1f   :  { %310 = vmatpush.bf16.msra.mxu2 %v4256_v32  ;;  %406 = vmatpush.bf16.msra.mxu3 %v4264_v33  ;;  %v3489_v8 = vld [vmem:[%s4867_s0 + $0xa0] sm:$0xff]  ;;  %v3456_v9 = vld [vmem:[%s4867_s0 + $0x98] sm:$0xff]  ;;  %v4288_v13 = vld [vmem:[#allocation3 + $0x190] sm:$0xff] }
  0x20   :  { %614 = vperm.xlu2 %4506, %v3320_v34   ;;  %v4296_v14 = vld [vmem:[#allocation3 + $0x1d0] sm:$0xff]  ;;  %v4271_v15 = vld [vmem:[#allocation3 + $0x108] sm:$0xff]  ;;  %v3524_v19 = vld [vmem:[%s4867_s0 + $0xb8] sm:$0xff] }
  0x21   :  { %609 = vperm.xlu1 %4505, %v3319_v35   ;;  %518 = vperm.xlu0 %4504, %v3286_v36   ;;  %v4279_v16 = vld [vmem:[#allocation3 + $0x148] sm:$0xff]  ;;  %v3523_v20 = vld [vmem:[%s4867_s0 + $0xb0] sm:$0xff]  ;;  %v4270_v22 = vld [vmem:[#allocation3 + $0x100] sm:$0xff] }
  0x22   :  { %119 = vmatpush.bf16.msra.mxu0 %v4239_v37  ;;  %215 = vmatpush.bf16.msra.mxu1 %v4247_v38  ;;  %v4287_v17 = vld [vmem:[#allocation3 + $0x188] sm:$0xff]  ;;  %v4278_v23 = vld [vmem:[#allocation3 + $0x140] sm:$0xff]  ;;  %v4309_v26 = vld [vmem:[#allocation3 + $0x238] sm:$0xff] }
  0x23   :  { %311 = vmatpush.bf16.msra.mxu2 %v4255_v39  ;;  %407 = vmatpush.bf16.msra.mxu3 %v4263_v40  ;;  %v4295_v18 = vld [vmem:[#allocation3 + $0x1c8] sm:$0xff]  ;;  %v4286_v24 = vld [vmem:[#allocation3 + $0x180] sm:$0xff]  ;;  %v4317_v27 = vld [vmem:[#allocation3 + $0x278] sm:$0xff] }
  0x24   :  { %v3490_v21 = vld [vmem:[%s4867_s0 + $0xa8] sm:$0xff]  ;;  %v4294_v25 = vld [vmem:[#allocation3 + $0x1c0] sm:$0xff]  ;;  %v4325_v28 = vld [vmem:[#allocation3 + $0x2b8] sm:$0xff] }
  0x25   :  { %v4333_v29 = vld [vmem:[#allocation3 + $0x2f8] sm:$0xff]  ;;  %v3591_v30 = vld [vmem:[%s4867_s0 + $0xd0] sm:$0xff]  ;;  %v3558_v31 = vld [vmem:[%s4867_s0 + $0xc8] sm:$0xff] }
  0x26   :  { %120 = vmatpush.bf16.msra.mxu0 %v4238_v41  ;;  %216 = vmatpush.bf16.msra.mxu1 %v4246_v42  ;;  %v4308_v32 = vld [vmem:[#allocation3 + $0x230] sm:$0xff]  ;;  %v3557_v33 = vld [vmem:[%s4867_s0 + $0xc0] sm:$0xff]  ;;  %v4307_v37 = vld [vmem:[#allocation3 + $0x228] sm:$0xff] }
  0x27   :  { %312 = vmatpush.bf16.msra.mxu2 %v4254_v43  ;;  %408 = vmatpush.bf16.msra.mxu3 %v4262_v44  ;;  %v4316_v34 = vld [vmem:[#allocation3 + $0x270] sm:$0xff]  ;;  %v4315_v38 = vld [vmem:[#allocation3 + $0x268] sm:$0xff]  ;;  %v3625_v42 = vld [vmem:[%s4867_s0 + $0xe0] sm:$0xff] }
  0x28   :  { %801 = vperm.xlu2 %4506, %v3387_v49   ;;  %v4324_v35 = vld [vmem:[#allocation3 + $0x2b0] sm:$0xff]  ;;  %v4323_v39 = vld [vmem:[#allocation3 + $0x2a8] sm:$0xff]  ;;  %v4306_v43 = vld [vmem:[#allocation3 + $0x220] sm:$0xff] }
  0x29   :  { %710 = vperm.xlu1 %4505, %v3354_v50   ;;  %705 = vperm.xlu0 %4504, %v3353_v52   ;;  %v4332_v36 = vld [vmem:[#allocation3 + $0x2f0] sm:$0xff]  ;;  %v4331_v40 = vld [vmem:[#allocation3 + $0x2e8] sm:$0xff]  ;;  %v3592_v44 = vld [vmem:[%s4867_s0 + $0xd8] sm:$0xff] }
  0x2a   :  { %497 = vmatpush.bf16.msrb.mxu0 %v4277_v45  ;;  %593 = vmatpush.bf16.msrb.mxu1 %v4285_v46  ;;  %v3626_v41 = vld [vmem:[%s4867_s0 + $0xe8] sm:$0xff]  ;;  %v4314_v45 = vld [vmem:[#allocation3 + $0x260] sm:$0xff]  ;;  %v4313_v49 = vld [vmem:[#allocation3 + $0x258] sm:$0xff] }
  0x2b   :  { %689 = vmatpush.bf16.msrb.mxu2 %v4293_v47  ;;  %785 = vmatpush.bf16.msrb.mxu3 %v4301_v48  ;;  %v4322_v46 = vld [vmem:[#allocation3 + $0x2a0] sm:$0xff]  ;;  %v4305_v48 = vld [vmem:[#allocation3 + $0x218] sm:$0xff] }
  0x2c   :  { %121 = vmatmul.bf16.vlgmr.msra.gmra.mxu0 %v4636_v51  ;;  %313 = vmatmul.bf16.vlgmr.msra.gmra.mxu2 %v4636_v51  ;;  %v4330_v47 = vld [vmem:[#allocation3 + $0x2e0] sm:$0xff]  ;;  %v4321_v50 = vld [vmem:[#allocation3 + $0x298] sm:$0xff] }
  0x2d   :  { %217 = vmatmul.bf16.vlgmr.msra.gmra.mxu1 %v4636_v51  ;;  %409 = vmatmul.bf16.vlgmr.msra.gmra.mxu3 %v4636_v51  ;;  %v4329_v52 = vld [vmem:[#allocation3 + $0x2d8] sm:$0xff] }
  0x2e   :  { %498 = vmatpush.bf16.msrb.mxu0 %v4276_v53  ;;  %594 = vmatpush.bf16.msrb.mxu1 %v4284_v54  ;;  %v3693_v53 = vld [vmem:[%s4867_s0 + $0x100] sm:$0xff]  ;;  %v3660_v54 = vld [vmem:[%s4867_s0 + $0xf8] sm:$0xff] }
  0x2f   :  { %690 = vmatpush.bf16.msrb.mxu2 %v4292_v55  ;;  %786 = vmatpush.bf16.msrb.mxu3 %v4300_v56  ;;  %v4304_v55 = vld [vmem:[#allocation3 + $0x210] sm:$0xff] }
  0x30   :  { %902 = vperm.xlu2 %4506, %v3422_v61   ;;  %v3659_v56 = vld [vmem:[%s4867_s0 + $0xf0] sm:$0xff]  ;;  %v4311_v61 = vld [vmem:[#allocation3 + $0x248] sm:$0xff] }
  0x31   :  { %897 = vperm.xlu1 %4505, %v3421_v62   ;;  %806 = vperm.xlu0 %4504, %v3388_v63   ;;  %v4319_v62 = vld [vmem:[#allocation3 + $0x288] sm:$0xff] }
  0x32   :  { %499 = vmatpush.bf16.msrb.mxu0 %v4275_v57  ;;  %595 = vmatpush.bf16.msrb.mxu1 %v4283_v58  ;;  %v4312_v57 = vld [vmem:[#allocation3 + $0x250] sm:$0xff]  ;;  %v4327_v63 = vld [vmem:[#allocation3 + $0x2c8] sm:$0xff] }
  0x33   :  { %691 = vmatpush.bf16.msrb.mxu2 %v4291_v59  ;;  %787 = vmatpush.bf16.msrb.mxu3 %v4299_v60  ;;  %v4320_v58 = vld [vmem:[#allocation3 + $0x290] sm:$0xff]  ;;  %v4303_v60 = vld [vmem:[#allocation3 + $0x208] sm:$0xff] }
  0x34   :  { %v4328_v59 = vld [vmem:[#allocation3 + $0x2d0] sm:$0xff] }
  0x36   :  { %500 = vmatpush.bf16.msrb.mxu0 %v4274_v0  ;;  %596 = vmatpush.bf16.msrb.mxu1 %v4282_v1  ;;  %v3728_v0 = vld [vmem:[%s4867_s0 + $0x118] sm:$0xff]  ;;  %v3727_v1 = vld [vmem:[%s4867_s0 + $0x110] sm:$0xff] }
  0x37   :  { %692 = vmatpush.bf16.msrb.mxu2 %v4290_v2  ;;  %788 = vmatpush.bf16.msrb.mxu3 %v4298_v3  ;;  %v4302_v2 = vld [vmem:[#allocation3 + $0x200] sm:$0xff]  ;;  %v3694_v3 = vld [vmem:[%s4867_s0 + $0x108] sm:$0xff] }
  0x38   :  { %1089 = vperm.xlu2 %4506, %v3489_v8   ;;  %v4349_v8 = vld [vmem:[#allocation3 + $0x378] sm:$0xff] }
  0x39   :  { %998 = vperm.xlu1 %4505, %v3456_v9   ;;  %993 = vperm.xlu0 %4504, %v3455_v10   ;;  %v4357_v9 = vld [vmem:[#allocation3 + $0x3b8] sm:$0xff] }
  0x3a   :  { %501 = vmatpush.bf16.msrb.mxu0 %v4273_v4  ;;  %597 = vmatpush.bf16.msrb.mxu1 %v4281_v5  ;;  %v4310_v4 = vld [vmem:[#allocation3 + $0x240] sm:$0xff]  ;;  %v4365_v10 = vld [vmem:[#allocation3 + $0x3f8] sm:$0xff] }
  0x3b   :  { %693 = vmatpush.bf16.msrb.mxu2 %v4289_v6  ;;  %789 = vmatpush.bf16.msrb.mxu3 %v4297_v7  ;;  %v4318_v5 = vld [vmem:[#allocation3 + $0x280] sm:$0xff]  ;;  %v4341_v7 = vld [vmem:[#allocation3 + $0x338] sm:$0xff] }
  0x3c   :  { %v4326_v6 = vld [vmem:[#allocation3 + $0x2c0] sm:$0xff] }
  0x3e   :  { %502 = vmatpush.bf16.msrb.mxu0 %v4272_v11  ;;  %598 = vmatpush.bf16.msrb.mxu1 %v4280_v12  ;;  %v4340_v11 = vld [vmem:[#allocation3 + $0x330] sm:$0xff] }
  0x3f   :  { %694 = vmatpush.bf16.msrb.mxu2 %v4288_v13  ;;  %790 = vmatpush.bf16.msrb.mxu3 %v4296_v14  ;;  %v4348_v12 = vld [vmem:[#allocation3 + $0x370] sm:$0xff] }
  0x40   :  { %1190 = vperm.xlu2 %4506, %v3524_v19   ;;  %v4356_v13 = vld [vmem:[#allocation3 + $0x3b0] sm:$0xff]  ;;  %v4347_v19 = vld [vmem:[#allocation3 + $0x368] sm:$0xff] }
  0x41   :  { %1185 = vperm.xlu1 %4505, %v3523_v20   ;;  %1094 = vperm.xlu0 %4504, %v3490_v21   ;;  %v4364_v14 = vld [vmem:[#allocation3 + $0x3f0] sm:$0xff]  ;;  %v4355_v20 = vld [vmem:[#allocation3 + $0x3a8] sm:$0xff] }
  0x42   :  { %503 = vmatpush.bf16.msrb.mxu0 %v4271_v15  ;;  %599 = vmatpush.bf16.msrb.mxu1 %v4279_v16  ;;  %v3795_v15 = vld [vmem:[%s4867_s0 + $0x130] sm:$0xff]  ;;  %v3762_v16 = vld [vmem:[%s4867_s0 + $0x128] sm:$0xff] }
  0x43   :  { %695 = vmatpush.bf16.msrb.mxu2 %v4287_v17  ;;  %791 = vmatpush.bf16.msrb.mxu3 %v4295_v18  ;;  %v3761_v17 = vld [vmem:[%s4867_s0 + $0x120] sm:$0xff]  ;;  %v4339_v18 = vld [vmem:[#allocation3 + $0x328] sm:$0xff] }
  0x44   :  { %v4363_v21 = vld [vmem:[#allocation3 + $0x3e8] sm:$0xff] }
  0x46   :  { %504 = vmatpush.bf16.msrb.mxu0 %v4270_v22  ;;  %600 = vmatpush.bf16.msrb.mxu1 %v4278_v23  ;;  %v4338_v22 = vld [vmem:[#allocation3 + $0x320] sm:$0xff] }
  0x47   :  { %696 = vmatpush.bf16.msrb.mxu2 %v4286_v24  ;;  %792 = vmatpush.bf16.msrb.mxu3 %v4294_v25  ;;  %v4346_v23 = vld [vmem:[#allocation3 + $0x360] sm:$0xff] }
  0x48   :  { %1377 = vperm.xlu2 %4506, %v3591_v30   ;;  %v4354_v24 = vld [vmem:[#allocation3 + $0x3a0] sm:$0xff]  ;;  %v4345_v30 = vld [vmem:[#allocation3 + $0x358] sm:$0xff] }
  0x49   :  { %505 = vmatmul.bf16.vlgmr.msrb.gmra.mxu0 %v4636_v51  ;;  %601 = vmatmul.bf16.vlgmr.msrb.gmra.mxu1 %v4636_v51  ;;  %v4362_v25 = vld [vmem:[#allocation3 + $0x3e0] sm:$0xff] }
  0x4a   :  { %881 = vmatpush.bf16.msra.mxu0 %v4309_v26  ;;  %977 = vmatpush.bf16.msra.mxu1 %v4317_v27  ;;  %v3830_v26 = vld [vmem:[%s4867_s0 + $0x148] sm:$0xff]  ;;  %v3829_v27 = vld [vmem:[%s4867_s0 + $0x140] sm:$0xff] }
  0x4b   :  { %1073 = vmatpush.bf16.msra.mxu2 %v4325_v28  ;;  %1169 = vmatpush.bf16.msra.mxu3 %v4333_v29  ;;  %v3796_v28 = vld [vmem:[%s4867_s0 + $0x138] sm:$0xff] }
  0x4c   :  { %697 = vmatmul.bf16.vlgmr.msrb.gmra.mxu2 %v4636_v51  ;;  %793 = vmatmul.bf16.vlgmr.msrb.gmra.mxu3 %v4636_v51  ;;  %v4337_v29 = vld [vmem:[#allocation3 + $0x318] sm:$0xff] }
  0x4d   :  { %1286 = vperm.xlu1 %4505, %v3558_v31   ;;  %1281 = vperm.xlu0 %4504, %v3557_v33   ;;  %v4353_v31 = vld [vmem:[#allocation3 + $0x398] sm:$0xff]  ;;  %v4336_v33 = vld [vmem:[#allocation3 + $0x310] sm:$0xff] }
  0x4e   :  { %882 = vmatpush.bf16.msra.mxu0 %v4308_v32  ;;  %978 = vmatpush.bf16.msra.mxu1 %v4316_v34  ;;  %v4361_v32 = vld [vmem:[#allocation3 + $0x3d8] sm:$0xff]  ;;  %v4344_v34 = vld [vmem:[#allocation3 + $0x350] sm:$0xff] }
  0x4f   :  { %1074 = vmatpush.bf16.msra.mxu2 %v4324_v35  ;;  %1170 = vmatpush.bf16.msra.mxu3 %v4332_v36  ;;  %v4352_v35 = vld [vmem:[#allocation3 + $0x390] sm:$0xff] }
  0x50   :  { %1478 = vperm.xlu2 %4506, %v3626_v41   ;;  %v4360_v36 = vld [vmem:[#allocation3 + $0x3d0] sm:$0xff]  ;;  %v4343_v41 = vld [vmem:[#allocation3 + $0x348] sm:$0xff] }
  0x52   :  { %883 = vmatpush.bf16.msra.mxu0 %v4307_v37  ;;  %979 = vmatpush.bf16.msra.mxu1 %v4315_v38  ;;  %v3897_v37 = vld [vmem:[%s4867_s0 + $0x160] sm:$0xff]  ;;  %v3864_v38 = vld [vmem:[%s4867_s0 + $0x158] sm:$0xff] }
  0x53   :  { %1075 = vmatpush.bf16.msra.mxu2 %v4323_v39  ;;  %1171 = vmatpush.bf16.msra.mxu3 %v4331_v40  ;;  %v3863_v39 = vld [vmem:[%s4867_s0 + $0x150] sm:$0xff]  ;;  %v4335_v40 = vld [vmem:[#allocation3 + $0x308] sm:$0xff] }
  0x55   :  { %1473 = vperm.xlu1 %4505, %v3625_v42   ;;  %1382 = vperm.xlu0 %4504, %v3592_v44   ;;  %v4351_v42 = vld [vmem:[#allocation3 + $0x388] sm:$0xff]  ;;  %v4334_v44 = vld [vmem:[#allocation3 + $0x300] sm:$0xff] }
  0x56   :  { %884 = vmatpush.bf16.msra.mxu0 %v4306_v43  ;;  %980 = vmatpush.bf16.msra.mxu1 %v4314_v45  ;;  %v4359_v43 = vld [vmem:[#allocation3 + $0x3c8] sm:$0xff]  ;;  %v4342_v45 = vld [vmem:[#allocation3 + $0x340] sm:$0xff] }
  0x57   :  { %1076 = vmatpush.bf16.msra.mxu2 %v4322_v46  ;;  %1172 = vmatpush.bf16.msra.mxu3 %v4330_v47  ;;  %v4350_v46 = vld [vmem:[#allocation3 + $0x380] sm:$0xff] }
  0x58   :  { %1665 = vperm.xlu2 %4506, %v3693_v53   ;;  %v4358_v47 = vld [vmem:[#allocation3 + $0x3c0] sm:$0xff]  ;;  %v3932_v53 = vld [vmem:[%s4867_s0 + $0x178] sm:$0xff] }
  0x5a   :  { %885 = vmatpush.bf16.msra.mxu0 %v4305_v48  ;;  %981 = vmatpush.bf16.msra.mxu1 %v4313_v49  ;;  %v4373_v48 = vld [vmem:[#allocation3 + $0x438] sm:$0xff] }
  0x5b   :  { %1077 = vmatpush.bf16.msra.mxu2 %v4321_v50  ;;  %1173 = vmatpush.bf16.msra.mxu3 %v4329_v52  ;;  %v4381_v49 = vld [vmem:[#allocation3 + $0x478] sm:$0xff] }
  0x5c   :  { %v4389_v50 = vld [vmem:[#allocation3 + $0x4b8] sm:$0xff] }
  0x5d   :  { %1574 = vperm.xlu1 %4505, %v3660_v54   ;;  %1569 = vperm.xlu0 %4504, %v3659_v56   ;;  %v4397_v52 = vld [vmem:[#allocation3 + $0x4f8] sm:$0xff]  ;;  %v3931_v54 = vld [vmem:[%s4867_s0 + $0x170] sm:$0xff] }
  0x5e   :  { %886 = vmatpush.bf16.msra.mxu0 %v4304_v55  ;;  %982 = vmatpush.bf16.msra.mxu1 %v4312_v57  ;;  %v3898_v55 = vld [vmem:[%s4867_s0 + $0x168] sm:$0xff]  ;;  %v4372_v56 = vld [vmem:[#allocation3 + $0x430] sm:$0xff] }
  0x5f   :  { %1078 = vmatpush.bf16.msra.mxu2 %v4320_v58  ;;  %1174 = vmatpush.bf16.msra.mxu3 %v4328_v59  ;;  %v4380_v57 = vld [vmem:[#allocation3 + $0x470] sm:$0xff] }
  0x60   :  { %1766 = vperm.xlu2 %4506, %v3728_v0   ;;  %v4388_v58 = vld [vmem:[#allocation3 + $0x4b0] sm:$0xff] }
  0x61   :  { %v4396_v59 = vld [vmem:[#allocation3 + $0x4f0] sm:$0xff] }
  0x62   :  { %887 = vmatpush.bf16.msra.mxu0 %v4303_v60  ;;  %983 = vmatpush.bf16.msra.mxu1 %v4311_v61  ;;  %v4371_v60 = vld [vmem:[#allocation3 + $0x428] sm:$0xff]  ;;  %v3999_v0 = vld [vmem:[%s4867_s0 + $0x190] sm:$0xff] }
  0x63   :  { %1079 = vmatpush.bf16.msra.mxu2 %v4319_v62  ;;  %1175 = vmatpush.bf16.msra.mxu3 %v4327_v63  ;;  %v4379_v61 = vld [vmem:[#allocation3 + $0x468] sm:$0xff] }
  0x64   :  { %v4387_v62 = vld [vmem:[#allocation3 + $0x4a8] sm:$0xff] }
  0x65   :  { %1761 = vperm.xlu1 %4505, %v3727_v1   ;;  %1670 = vperm.xlu0 %4504, %v3694_v3   ;;  %v4395_v63 = vld [vmem:[#allocation3 + $0x4e8] sm:$0xff]  ;;  %v4370_v3 = vld [vmem:[#allocation3 + $0x420] sm:$0xff] }
  0x66   :  { %888 = vmatpush.bf16.msra.mxu0 %v4302_v2  ;;  %984 = vmatpush.bf16.msra.mxu1 %v4310_v4  ;;  %v3966_v1 = vld [vmem:[%s4867_s0 + $0x188] sm:$0xff]  ;;  %v3965_v2 = vld [vmem:[%s4867_s0 + $0x180] sm:$0xff] }
  0x67   :  { %1080 = vmatpush.bf16.msra.mxu2 %v4318_v5  ;;  %1176 = vmatpush.bf16.msra.mxu3 %v4326_v6  ;;  %v4378_v4 = vld [vmem:[#allocation3 + $0x460] sm:$0xff] }
  0x68   :  { %1953 = vperm.xlu2 %4506, %v3795_v15   ;;  %v4386_v5 = vld [vmem:[#allocation3 + $0x4a0] sm:$0xff]  ;;  %v4376_v15 = vld [vmem:[#allocation3 + $0x450] sm:$0xff] }
  0x69   :  { %889 = vmatmul.bf16.vlgmr.msra.gmra.mxu0 %v4636_v51  ;;  %985 = vmatmul.bf16.vlgmr.msra.gmra.mxu1 %v4636_v51  ;;  %v4394_v6 = vld [vmem:[#allocation3 + $0x4e0] sm:$0xff] }
  0x6a   :  { %1265 = vmatpush.bf16.msrb.mxu0 %v4341_v7  ;;  %1361 = vmatpush.bf16.msrb.mxu1 %v4349_v8  ;;  %v4369_v7 = vld [vmem:[#allocation3 + $0x418] sm:$0xff] }
  0x6b   :  { %1457 = vmatpush.bf16.msrb.mxu2 %v4357_v9  ;;  %1553 = vmatpush.bf16.msrb.mxu3 %v4365_v10  ;;  %v4377_v8 = vld [vmem:[#allocation3 + $0x458] sm:$0xff] }
  0x6c   :  { %1081 = vmatmul.bf16.vlgmr.msra.gmra.mxu2 %v4636_v51  ;;  %1177 = vmatmul.bf16.vlgmr.msra.gmra.mxu3 %v4636_v51  ;;  %v4385_v9 = vld [vmem:[#allocation3 + $0x498] sm:$0xff] }
  0x6d   :  { %1862 = vperm.xlu1 %4505, %v3762_v16   ;;  %1857 = vperm.xlu0 %4504, %v3761_v17   ;;  %v4393_v10 = vld [vmem:[#allocation3 + $0x4d8] sm:$0xff]  ;;  %v4384_v16 = vld [vmem:[#allocation3 + $0x490] sm:$0xff] }
  0x6e   :  { %1266 = vmatpush.bf16.msrb.mxu0 %v4340_v11  ;;  %1362 = vmatpush.bf16.msrb.mxu1 %v4348_v12  ;;  %v4034_v11 = vld [vmem:[%s4867_s0 + $0x1a8] sm:$0xff]  ;;  %v4033_v12 = vld [vmem:[%s4867_s0 + $0x1a0] sm:$0xff]  ;;  %v4392_v17 = vld [vmem:[#allocation3 + $0x4d0] sm:$0xff] }
  0x6f   :  { %1458 = vmatpush.bf16.msrb.mxu2 %v4356_v13  ;;  %1554 = vmatpush.bf16.msrb.mxu3 %v4364_v14  ;;  %v4000_v13 = vld [vmem:[%s4867_s0 + $0x198] sm:$0xff]  ;;  %v4368_v14 = vld [vmem:[#allocation3 + $0x410] sm:$0xff] }
  0x70   :  { %2054 = vperm.xlu2 %4506, %v3830_v26   ;;  %v4374_v26 = vld [vmem:[#allocation3 + $0x440] sm:$0xff] }
  0x72   :  { %1267 = vmatpush.bf16.msrb.mxu0 %v4339_v18  ;;  %1363 = vmatpush.bf16.msrb.mxu1 %v4347_v19  ;;  %v4367_v18 = vld [vmem:[#allocation3 + $0x408] sm:$0xff] }
  0x73   :  { %1459 = vmatpush.bf16.msrb.mxu2 %v4355_v20  ;;  %1555 = vmatpush.bf16.msrb.mxu3 %v4363_v21  ;;  %v4375_v19 = vld [vmem:[#allocation3 + $0x448] sm:$0xff] }
  0x74   :  { %v4383_v20 = vld [vmem:[#allocation3 + $0x488] sm:$0xff] }
  0x75   :  { %2049 = vperm.xlu1 %4505, %v3829_v27   ;;  %1958 = vperm.xlu0 %4504, %v3796_v28   ;;  %v4391_v21 = vld [vmem:[#allocation3 + $0x4c8] sm:$0xff]  ;;  %v4382_v28 = vld [vmem:[#allocation3 + $0x480] sm:$0xff] }
  0x76   :  { %1268 = vmatpush.bf16.msrb.mxu0 %v4338_v22  ;;  %1364 = vmatpush.bf16.msrb.mxu1 %v4346_v23  ;;  %v4101_v22 = vld [vmem:[%s4867_s0 + $0x1c0] sm:$0xff]  ;;  %v4068_v23 = vld [vmem:[%s4867_s0 + $0x1b8] sm:$0xff] }
  0x77   :  { %1460 = vmatpush.bf16.msrb.mxu2 %v4354_v24  ;;  %1556 = vmatpush.bf16.msrb.mxu3 %v4362_v25  ;;  %v4067_v24 = vld [vmem:[%s4867_s0 + $0x1b0] sm:$0xff]  ;;  %v4366_v25 = vld [vmem:[#allocation3 + $0x400] sm:$0xff] }
  0x78   :  { %2241 = vperm.xlu2 %4506, %v3897_v37   ;;  %v4428_v37 = vld [vmem:[#allocation3 + $0x5f0] sm:$0xff] }
  0x7a   :  { %1269 = vmatpush.bf16.msrb.mxu0 %v4337_v29  ;;  %1365 = vmatpush.bf16.msrb.mxu1 %v4345_v30  ;;  %v4390_v29 = vld [vmem:[#allocation3 + $0x4c0] sm:$0xff]  ;;  %v4405_v30 = vld [vmem:[#allocation3 + $0x538] sm:$0xff] }
  0x7b   :  { %1461 = vmatpush.bf16.msrb.mxu2 %v4353_v31  ;;  %1557 = vmatpush.bf16.msrb.mxu3 %v4361_v32  ;;  %v130_v27 = vpop.permute.xlu0 %129  ;;  %v4413_v31 = vld [vmem:[#allocation3 + $0x578] sm:$0xff] }
  0x7c   :  { %v4421_v32 = vld [vmem:[#allocation3 + $0x5b8] sm:$0xff] }
  0x7d   :  { %2150 = vperm.xlu1 %4505, %v3864_v38   ;;  %2145 = vperm.xlu0 %4504, %v3863_v39   ;;  %v226_v38 = vpop.permute.xlu1 %225  ;;  %v4136_v39 = vld [vmem:[%s4867_s0 + $0x1d8] sm:$0xff] }
  0x7e   :  { %1270 = vmatpush.bf16.msrb.mxu0 %v4336_v33  ;;  %1366 = vmatpush.bf16.msrb.mxu1 %v4344_v34  ;;  %v4429_v33 = vld [vmem:[#allocation3 + $0x5f8] sm:$0xff]  ;;  %v4404_v34 = vld [vmem:[#allocation3 + $0x530] sm:$0xff] }
  0x7f   :  { %1462 = vmatpush.bf16.msrb.mxu2 %v4352_v35  ;;  %1558 = vmatpush.bf16.msrb.mxu3 %v4360_v36  ;;  %v4412_v35 = vld [vmem:[#allocation3 + $0x570] sm:$0xff] }
  0x80   :  { %2342 = vperm.xlu2 %4506, %v3932_v53   ;;  %v4420_v36 = vld [vmem:[#allocation3 + $0x5b0] sm:$0xff]  ;;  %v4418_v53 = vld [vmem:[#allocation3 + $0x5a0] sm:$0xff] }
  0x82   :  { %1271 = vmatpush.bf16.msrb.mxu0 %v4335_v40  ;;  %1367 = vmatpush.bf16.msrb.mxu1 %v4343_v41  ;;  %v4135_v40 = vld [vmem:[%s4867_s0 + $0x1d0] sm:$0xff]  ;;  %v4102_v41 = vld [vmem:[%s4867_s0 + $0x1c8] sm:$0xff] }
  0x83   :  { %1463 = vmatpush.bf16.msrb.mxu2 %v4351_v42  ;;  %1559 = vmatpush.bf16.msrb.mxu3 %v4359_v43  ;;  %v4403_v42 = vld [vmem:[#allocation3 + $0x528] sm:$0xff] }
  0x84   :  { %v4411_v43 = vld [vmem:[#allocation3 + $0x568] sm:$0xff] }
  0x85   :  { %2337 = vperm.xlu1 %4505, %v3931_v54   ;;  %2246 = vperm.xlu0 %4504, %v3898_v55   ;;  %v4426_v54 = vld [vmem:[#allocation3 + $0x5e0] sm:$0xff] }
  0x86   :  { %1272 = vmatpush.bf16.msrb.mxu0 %v4334_v44  ;;  %1368 = vmatpush.bf16.msrb.mxu1 %v4342_v45  ;;  %v135_v44 = vpop.permute.xlu0 %134  ;;  %v4419_v45 = vld [vmem:[#allocation3 + $0x5a8] sm:$0xff] }
  0x87   :  { %1464 = vmatpush.bf16.msrb.mxu2 %v4350_v46  ;;  %1560 = vmatpush.bf16.msrb.mxu3 %v4358_v47  ;;  %v4427_v46 = vld [vmem:[#allocation3 + $0x5e8] sm:$0xff] }
  0x88   :  { %2529 = vperm.xlu2 %4506, %v3999_v0   ;;  %v4417_v0 = vld [vmem:[#allocation3 + $0x598] sm:$0xff] }
  0x89   :  { %1273 = vmatmul.bf16.vlgmr.msrb.gmra.mxu0 %v4636_v51  ;;  %1369 = vmatmul.bf16.vlgmr.msrb.gmra.mxu1 %v4636_v51 }
  0x8a   :  { %1649 = vmatpush.bf16.msra.mxu0 %v4373_v48  ;;  %1745 = vmatpush.bf16.msra.mxu1 %v4381_v49  ;;  %v4402_v49 = vld [vmem:[#allocation3 + $0x520] sm:$0xff] }
  0x8b   :  { %1841 = vmatpush.bf16.msra.mxu2 %v4389_v50  ;;  %1937 = vmatpush.bf16.msra.mxu3 %v4397_v52  ;;  %v4410_v50 = vld [vmem:[#allocation3 + $0x560] sm:$0xff] }
  0x8c   :  { %1465 = vmatmul.bf16.vlgmr.msrb.gmra.mxu2 %v4636_v51  ;;  %1561 = vmatmul.bf16.vlgmr.msrb.gmra.mxu3 %v4636_v51 }
  0x8d   :  { %2438 = vperm.xlu1 %4505, %v3966_v1   ;;  %2433 = vperm.xlu0 %4504, %v3965_v2   ;;  %v4425_v1 = vld [vmem:[#allocation3 + $0x5d8] sm:$0xff] }
  0x8e   :  { %1650 = vmatpush.bf16.msra.mxu0 %v4372_v56  ;;  %1746 = vmatpush.bf16.msra.mxu1 %v4380_v57  ;;  %v4203_v56 = vld [vmem:[%s4867_s0 + $0x1f0] sm:$0xff]  ;;  %v4170_v57 = vld [vmem:[%s4867_s0 + $0x1e8] sm:$0xff] }
  0x8f   :  { %1842 = vmatpush.bf16.msra.mxu2 %v4388_v58  ;;  %1938 = vmatpush.bf16.msra.mxu3 %v4396_v59  ;;  %v322_v59 = vpop.permute.xlu2 %321 }
  0x90   :  { %2630 = vperm.xlu2 %4506, %v4034_v11  }
  0x92   :  { %1651 = vmatpush.bf16.msra.mxu0 %v4371_v60  ;;  %1747 = vmatpush.bf16.msra.mxu1 %v4379_v61  ;;  %v4169_v60 = vld [vmem:[%s4867_s0 + $0x1e0] sm:$0xff]  ;;  %v4401_v61 = vld [vmem:[#allocation3 + $0x518] sm:$0xff] }
  0x93   :  { %1843 = vmatpush.bf16.msra.mxu2 %v4387_v62  ;;  %1939 = vmatpush.bf16.msra.mxu3 %v4395_v63  ;;  %v4409_v62 = vld [vmem:[#allocation3 + $0x558] sm:$0xff]  ;;  %v231_v63 = vpop.permute.xlu1 %230 }
  0x95   :  { %2625 = vperm.xlu1 %4505, %v4033_v12   ;;  %2534 = vperm.xlu0 %4504, %v4000_v13   ;;  %v4416_v12 = vld [vmem:[#allocation3 + $0x590] sm:$0xff] }
  0x96   :  { %1652 = vmatpush.bf16.msra.mxu0 %v4370_v3  ;;  %1748 = vmatpush.bf16.msra.mxu1 %v4378_v4  ;;  %v418_v4 = vpop.permute.xlu0 %417  ;;  %v4424_v13 = vld [vmem:[#allocation3 + $0x5d0] sm:$0xff] }
  0x97   :  { %1844 = vmatpush.bf16.msra.mxu2 %v4386_v5  ;;  %1940 = vmatpush.bf16.msra.mxu3 %v4394_v6 }
  0x98   :  { %2817 = vperm.xlu2 %4506, %v4101_v22   ;;  %v4423_v22 = vld [vmem:[#allocation3 + $0x5c8] sm:$0xff] }
  0x9a   :  { %1653 = vmatpush.bf16.msra.mxu0 %v4369_v7  ;;  %1749 = vmatpush.bf16.msra.mxu1 %v4377_v8  ;;  %v4400_v8 = vld [vmem:[#allocation3 + $0x510] sm:$0xff] }
  0x9b   :  { %1845 = vmatpush.bf16.msra.mxu2 %v4385_v9  ;;  %1941 = vmatpush.bf16.msra.mxu3 %v4393_v10  ;;  %v4408_v9 = vld [vmem:[#allocation3 + $0x550] sm:$0xff] }
  0x9d   :  { %2726 = vperm.xlu1 %4505, %v4068_v23   ;;  %2721 = vperm.xlu0 %4504, %v4067_v24   ;;  %v327_v23 = vpop.permute.xlu2 %326 }
  0x9e   :  { %1654 = vmatpush.bf16.msra.mxu0 %v4368_v14  ;;  %1750 = vmatpush.bf16.msra.mxu1 %v4376_v15 }
  0x9f   :  { %1846 = vmatpush.bf16.msra.mxu2 %v4384_v16  ;;  %1942 = vmatpush.bf16.msra.mxu3 %v4392_v17 }
  0xa0   :  { %2918 = vperm.xlu2 %4506, %v4136_v39   ;;  %v519_v39 = vpop.permute.xlu0 %518 }
  0xa2   :  { %1655 = vmatpush.bf16.msra.mxu0 %v4367_v18  ;;  %1751 = vmatpush.bf16.msra.mxu1 %v4375_v19  ;;  %v4204_v18 = vld [vmem:[%s4867_s0 + $0x1f8] sm:$0xff]  ;;  %v4399_v19 = vld [vmem:[#allocation3 + $0x508] sm:$0xff] }
  0xa3   :  { %1847 = vmatpush.bf16.msra.mxu2 %v4383_v20  ;;  %1943 = vmatpush.bf16.msra.mxu3 %v4391_v21  ;;  %v4407_v20 = vld [vmem:[#allocation3 + $0x548] sm:$0xff] }
  0xa4   :  { %v4415_v21 = vld [vmem:[#allocation3 + $0x588] sm:$0xff] }
  0xa5   :  { %2913 = vperm.xlu1 %4505, %v4135_v40   ;;  %2822 = vperm.xlu0 %4504, %v4102_v41   ;;  %v4436_v40 = vld [vmem:[#allocation3 + $0x630] sm:$0xff] }
  0xa6   :  { %1656 = vmatpush.bf16.msra.mxu0 %v4366_v25  ;;  %1752 = vmatpush.bf16.msra.mxu1 %v4374_v26  ;;  %v423_v25 = vpop.permute.xlu1 %422  ;;  %v4444_v41 = vld [vmem:[#allocation3 + $0x670] sm:$0xff] }
  0xa7   :  { %1848 = vmatpush.bf16.msra.mxu2 %v4382_v28  ;;  %1944 = vmatpush.bf16.msra.mxu3 %v4390_v29  ;;  %v4398_v28 = vld [vmem:[#allocation3 + $0x500] sm:$0xff] }
  0xa8   :  { %3105 = vperm.xlu2 %4506, %v4203_v56   ;;  %v4406_v29 = vld [vmem:[#allocation3 + $0x540] sm:$0xff] }
  0xa9   :  { %1657 = vmatmul.bf16.vlgmr.msra.gmra.mxu0 %v4636_v51  ;;  %1753 = vmatmul.bf16.vlgmr.msra.gmra.mxu1 %v4636_v51  ;;  %v122_v47 = vpop.f32.mrf.mxu0  ;;  %v4434_v56 = vld [vmem:[#allocation3 + $0x620] sm:$0xff] }
  0xaa   :  { %2033 = vmatpush.bf16.msrb.mxu0 %v4405_v30  ;;  %2129 = vmatpush.bf16.msrb.mxu1 %v4413_v31  ;;  %v137_v48 = vmul.f32 %v130_v27, %v122_v47  ;;  %v218_v52 = vpop.f32.mrf.mxu1  ;;  %v4414_v31 = vld [vmem:[#allocation3 + $0x580] sm:$0xff]  ;;  %v4443_v47 = vld [vmem:[#allocation3 + $0x668] sm:$0xff] }
  0xab   :  { %2225 = vmatpush.bf16.msrb.mxu2 %v4421_v32  ;;  %2321 = vmatpush.bf16.msrb.mxu3 %v4429_v33  ;;  %v233_v55 = vmul.f32 %v226_v38, %v218_v52  ;;  %v4422_v32 = vld [vmem:[#allocation3 + $0x5c0] sm:$0xff] }
  0xac   :  { %1849 = vmatmul.bf16.vlgmr.msra.gmra.mxu2 %v4636_v51  ;;  %1945 = vmatmul.bf16.vlgmr.msra.gmra.mxu3 %v4636_v51 }
  0xad   :  { %v235_v58 = vadd.f32 %v233_v55, %v137_v48  ;;  %3014 = vperm.xlu1 %4505, %v4170_v57   ;;  %3009 = vperm.xlu0 %4504, %v4169_v60   ;;  %v4451_v48 = vld [vmem:[#allocation3 + $0x6a8] sm:$0xff]  ;;  %v4442_v57 = vld [vmem:[#allocation3 + $0x660] sm:$0xff] }
  0xae   :  { %2034 = vmatpush.bf16.msrb.mxu0 %v4404_v34  ;;  %2130 = vmatpush.bf16.msrb.mxu1 %v4412_v35  ;;  %v4437_v34 = vld [vmem:[#allocation3 + $0x638] sm:$0xff] }
  0xaf   :  { %2226 = vmatpush.bf16.msrb.mxu2 %v4420_v36  ;;  %2322 = vmatpush.bf16.msrb.mxu3 %v4428_v37  ;;  %v314_v2 = vpop.f32.mrf.mxu2  ;;  %v4445_v35 = vld [vmem:[#allocation3 + $0x678] sm:$0xff] }
  0xb0   :  { %v329_v5 = vmul.f32 %v322_v59, %v314_v2  ;;  %v410_v7 = vpop.f32.mrf.mxu3  ;;  %v4453_v36 = vld [vmem:[#allocation3 + $0x6b8] sm:$0xff]  ;;  %v4458_v59 = vld [vmem:[#allocation3 + $0x6e0] sm:$0xff] }
  0xb1   :  { %v124_v3 = vpop.f32.mrf.mxu0  ;;  %v425_v10 = vmul.f32 %v418_v4, %v410_v7  ;;  %v4461_v37 = vld [vmem:[#allocation3 + $0x6f8] sm:$0xff] }
  0xb2   :  { %2035 = vmatpush.bf16.msrb.mxu0 %v4403_v42  ;;  %2131 = vmatpush.bf16.msrb.mxu1 %v4411_v43  ;;  %v138_v6 = vmul.f32 %v135_v44, %v124_v3  ;;  %v220_v11 = vpop.f32.mrf.mxu1  ;;  %v331_v14 = vadd.f32 %v329_v5, %v235_v58  ;;  %v4452_v42 = vld [vmem:[#allocation3 + $0x6b0] sm:$0xff]  ;;  %v514_v44 = vpop.permute.xlu2 %513  ;;  %v4450_v58 = vld [vmem:[#allocation3 + $0x6a0] sm:$0xff]  ;;  %v4441_v2 = vld [vmem:[#allocation3 + $0x658] sm:$0xff] }
  0xb3   :  { %2227 = vmatpush.bf16.msrb.mxu2 %v4419_v45  ;;  %2323 = vmatpush.bf16.msrb.mxu3 %v4427_v46  ;;  %v234_v15 = vmul.f32 %v231_v63, %v220_v11  ;;  %v4460_v43 = vld [vmem:[#allocation3 + $0x6f0] sm:$0xff]  ;;  %v610_v45 = vpop.permute.xlu1 %609  ;;  %v4435_v46 = vld [vmem:[#allocation3 + $0x628] sm:$0xff]  ;;  %v4449_v3 = vld [vmem:[#allocation3 + $0x698] sm:$0xff] }
  0xb4   :  { %v4805_v16 = vadd.f32 %v425_v10, %v331_v14  ;;  %v4457_v4 = vld [vmem:[#allocation3 + $0x6d8] sm:$0xff]  ;;  %v4448_v14 = vld [vmem:[#allocation3 + $0x690] sm:$0xff] }
  0xb5   :  { %v236_v17 = vadd.f32 %v234_v15, %v138_v6  ;;  %3110 = vperm.xlu0 %4504, %v4204_v18   ;;  %v4456_v15 = vld [vmem:[#allocation3 + $0x6d0] sm:$0xff] }
  0xb6   :  { %2036 = vmatpush.bf16.msrb.mxu0 %v4402_v49  ;;  %2132 = vmatpush.bf16.msrb.mxu1 %v4410_v50  ;;  %v4459_v49 = vld [vmem:[#allocation3 + $0x6e8] sm:$0xff] }
  0xb7   :  { %2228 = vmatpush.bf16.msrb.mxu2 %v4418_v53  ;;  %2324 = vmatpush.bf16.msrb.mxu3 %v4426_v54  ;;  %v316_v24 = vpop.f32.mrf.mxu2 }
  0xb8   :  { %v330_v26 = vmul.f32 %v327_v23, %v316_v24  ;;  %v412_v27 = vpop.f32.mrf.mxu3  ;;  %v4447_v24 = vld [vmem:[#allocation3 + $0x688] sm:$0xff] }
  0xb9   :  { %v426_v30 = vmul.f32 %v423_v25, %v412_v27  ;;  %v4455_v25 = vld [vmem:[#allocation3 + $0x6c8] sm:$0xff] }
  0xba   :  { %2037 = vmatpush.bf16.msrb.mxu0 %v4401_v61  ;;  %2133 = vmatpush.bf16.msrb.mxu1 %v4409_v62  ;;  %v332_v33 = vadd.f32 %v330_v26, %v236_v17 }
  0xbb   :  { %2229 = vmatpush.bf16.msrb.mxu2 %v4417_v0  ;;  %2325 = vmatpush.bf16.msrb.mxu3 %v4425_v1  ;;  %v615_v0 = vpop.permute.xlu2 %614  ;;  %v4433_v1 = vld [vmem:[#allocation3 + $0x618] sm:$0xff] }
  0xbc   :  { %v4810_v38 = vadd.f32 %v426_v30, %v332_v33  ;;  %v4430_v30 = vld [vmem:[#allocation3 + $0x600] sm:$0xff] }
  0xbd   :  { %v4454_v33 = vld [vmem:[#allocation3 + $0x6c0] sm:$0xff] }
  0xbe   :  { %2038 = vmatpush.bf16.msrb.mxu0 %v4400_v8  ;;  %2134 = vmatpush.bf16.msrb.mxu1 %v4408_v9  ;;  %v711_v8 = vpop.permute.xlu1 %710 }
  0xbf   :  { %2230 = vmatpush.bf16.msrb.mxu2 %v4416_v12  ;;  %2326 = vmatpush.bf16.msrb.mxu3 %v4424_v13  ;;  %v4432_v12 = vld [vmem:[#allocation3 + $0x610] sm:$0xff] }
  0xc0   :  { %v4440_v13 = vld [vmem:[#allocation3 + $0x650] sm:$0xff] }
  0xc2   :  { %2039 = vmatpush.bf16.msrb.mxu0 %v4399_v19  ;;  %2135 = vmatpush.bf16.msrb.mxu1 %v4407_v20 }
  0xc3   :  { %2231 = vmatpush.bf16.msrb.mxu2 %v4415_v21  ;;  %2327 = vmatpush.bf16.msrb.mxu3 %v4423_v22  ;;  %v4431_v21 = vld [vmem:[#allocation3 + $0x608] sm:$0xff]  ;;  %v802_v27 = vpop.permute.xlu2 %801 }
  0xc4   :  { %v4439_v22 = vld [vmem:[#allocation3 + $0x648] sm:$0xff] }
  0xc6   :  { %2040 = vmatpush.bf16.msrb.mxu0 %v4398_v28  ;;  %2136 = vmatpush.bf16.msrb.mxu1 %v4406_v29  ;;  %v506_v50 = vpop.f32.mrf.mxu0  ;;  %v602_v52 = vpop.f32.mrf.mxu1 }
  0xc7   :  { %2232 = vmatpush.bf16.msrb.mxu2 %v4414_v31  ;;  %2328 = vmatpush.bf16.msrb.mxu3 %v4422_v32  ;;  %v521_v53 = vmul.f32 %v514_v44, %v506_v50  ;;  %v617_v54 = vmul.f32 %v610_v45, %v602_v52  ;;  %v898_v29 = vpop.permute.xlu1 %897  ;;  %v4438_v31 = vld [vmem:[#allocation3 + $0x640] sm:$0xff] }
  0xc8   :  { %v4446_v32 = vld [vmem:[#allocation3 + $0x680] sm:$0xff] }
  0xc9   :  { %2041 = vmatmul.bf16.vlgmr.msrb.gmra.mxu0 %v4636_v51  ;;  %2137 = vmatmul.bf16.vlgmr.msrb.gmra.mxu1 %v4636_v51  ;;  %v523_v55 = vadd.f32 %v521_v53, %v4805_v16  ;;  %v4828_v44 = vld [vmem:[%s4868_s1] sm:$0xff]  ;;  %s4564_s1 = smov [#allocation6]  }
  0xca   :  { %2417 = vmatpush.bf16.msra.mxu0 %v4437_v34  ;;  %2513 = vmatpush.bf16.msra.mxu1 %v4445_v35  ;;  %v4469_v34 = vld [vmem:[#allocation3 + $0x738] sm:$0xff]  ;;  %s3132_s20 = sshll.u32 %s4564_s1, 4  ;;  %s3133_s20 = int_to_ptr.vmem [resolvable:$true] %s3132_s20 }
  0xcb   :  { %2609 = vmatpush.bf16.msra.mxu2 %v4453_v36  ;;  %2705 = vmatpush.bf16.msra.mxu3 %v4461_v37  ;;  %v619_v60 = vadd.f32 %v617_v54, %v523_v55  ;;  %v4477_v35 = vld [vmem:[#allocation3 + $0x778] sm:$0xff] }
  0xcc   :  { %2233 = vmatmul.bf16.vlgmr.msrb.gmra.mxu2 %v4636_v51  ;;  %2329 = vmatmul.bf16.vlgmr.msrb.gmra.mxu3 %v4636_v51  ;;  %v706_v51 = vpop.permute.xlu0 %705  ;;  %v4485_v36 = vld [vmem:[#allocation3 + $0x7b8] sm:$0xff] }
  0xcd   :  { %v4493_v37 = vld [vmem:[#allocation3 + $0x7f8] sm:$0xff] }
  0xce   :  { %2418 = vmatpush.bf16.msra.mxu0 %v4436_v40  ;;  %2514 = vmatpush.bf16.msra.mxu1 %v4444_v41  ;;  %v508_v6 = vpop.f32.mrf.mxu0  ;;  %v604_v7 = vpop.f32.mrf.mxu1  ;;  %v4484_v40 = vld [vmem:[#allocation3 + $0x7b0] sm:$0xff] }
  0xcf   :  { %2610 = vmatpush.bf16.msra.mxu2 %v4452_v42  ;;  %2706 = vmatpush.bf16.msra.mxu3 %v4460_v43  ;;  %v698_v61 = vpop.f32.mrf.mxu2  ;;  %v4817_v63 = vpop.f32.mrf.mxu3  ;;  %v522_v9 = vmul.f32 %v519_v39, %v508_v6  ;;  %v618_v10 = vmul.f32 %v615_v0, %v604_v7  ;;  %v4476_v39 = vld [vmem:[#allocation3 + $0x770] sm:$0xff]  ;;  %v4473_v0 = vld [vmem:[#allocation3 + $0x758] sm:$0xff] }
  0xd0   :  { %v713_v62 = vmul.f32 %v706_v51, %v698_v61  ;;  %v4492_v41 = vld [vmem:[#allocation3 + $0x7f0] sm:$0xff]  ;;  %v903_v42 = vpop.permute.xlu2 %902  ;;  %v809_v43 = vmul.f32 %v802_v27, %v4817_v63  ;;  %v999_v45 = vpop.permute.xlu1 %998  ;;  %v4466_v51 = vld [vmem:[#allocation3 + $0x720] sm:$0xff]  ;;  %v4465_v63 = vld [vmem:[#allocation3 + $0x718] sm:$0xff] }
  0xd1   :  { %v524_v11 = vadd.f32 %v522_v9, %v4810_v38  ;;  %v4468_v38 = vld [vmem:[#allocation3 + $0x730] sm:$0xff] }
  0xd2   :  { %2419 = vmatpush.bf16.msra.mxu0 %v4435_v46  ;;  %2515 = vmatpush.bf16.msra.mxu1 %v4443_v47  ;;  %v4819_v5 = vadd.f32 %v713_v62, %v619_v60  ;;  %v4467_v46 = vld [vmem:[#allocation3 + $0x728] sm:$0xff]  ;;  %v4490_v60 = vld [vmem:[#allocation3 + $0x7e0] sm:$0xff] }
  0xd3   :  { %2611 = vmatpush.bf16.msra.mxu2 %v4451_v48  ;;  %2707 = vmatpush.bf16.msra.mxu3 %v4459_v49  ;;  %v620_v18 = vadd.f32 %v618_v10, %v524_v11  ;;  %v4475_v47 = vld [vmem:[#allocation3 + $0x768] sm:$0xff] }
  0xd4   :  { %v807_v17 = vpop.permute.xlu0 %806  ;;  %v4483_v48 = vld [vmem:[#allocation3 + $0x7a8] sm:$0xff]  ;;  %v811_v52 = vadd.f32 %v809_v43, %v4819_v5 }
  0xd5   :  { %v4491_v49 = vld [vmem:[#allocation3 + $0x7e8] sm:$0xff] }
  0xd6   :  { %2420 = vmatpush.bf16.msra.mxu0 %v4434_v56  ;;  %2516 = vmatpush.bf16.msra.mxu1 %v4442_v57 }
  0xd7   :  { %2612 = vmatpush.bf16.msra.mxu2 %v4450_v58  ;;  %2708 = vmatpush.bf16.msra.mxu3 %v4458_v59  ;;  %v700_v16 = vpop.f32.mrf.mxu2  ;;  %v796_v20 = vpop.f32.mrf.mxu3  ;;  %v4474_v58 = vld [vmem:[#allocation3 + $0x760] sm:$0xff] }
  0xd8   :  { %v714_v19 = vmul.f32 %v711_v8, %v700_v16  ;;  %v810_v23 = vmul.f32 %v807_v17, %v796_v20  ;;  %v4482_v59 = vld [vmem:[#allocation3 + $0x7a0] sm:$0xff]  ;;  %v1090_v62 = vpop.permute.xlu2 %1089  ;;  %v1186_v7 = vpop.permute.xlu1 %1185  ;;  %v4480_v17 = vld [vmem:[#allocation3 + $0x790] sm:$0xff] }
  0xda   :  { %2421 = vmatpush.bf16.msra.mxu0 %v4433_v1  ;;  %2517 = vmatpush.bf16.msra.mxu1 %v4441_v2  ;;  %v716_v26 = vadd.f32 %v714_v19, %v620_v18  ;;  %v4481_v2 = vld [vmem:[#allocation3 + $0x798] sm:$0xff]  ;;  %v4488_v18 = vld [vmem:[#allocation3 + $0x7d0] sm:$0xff] }
  0xdb   :  { %2613 = vmatpush.bf16.msra.mxu2 %v4449_v3  ;;  %2709 = vmatpush.bf16.msra.mxu3 %v4457_v4  ;;  %v4489_v3 = vld [vmem:[#allocation3 + $0x7d8] sm:$0xff] }
  0xdc   :  { %v4822_v28 = vadd.f32 %v810_v23, %v716_v26  ;;  %v994_v55 = vpop.permute.xlu0 %993 }
  0xde   :  { %2422 = vmatpush.bf16.msra.mxu0 %v4432_v12  ;;  %2518 = vmatpush.bf16.msra.mxu1 %v4440_v13 }
  0xdf   :  { %2614 = vmatpush.bf16.msra.mxu2 %v4448_v14  ;;  %2710 = vmatpush.bf16.msra.mxu3 %v4456_v15  ;;  %v4464_v14 = vld [vmem:[#allocation3 + $0x710] sm:$0xff] }
  0xe0   :  { %v4472_v15 = vld [vmem:[#allocation3 + $0x750] sm:$0xff] }
  0xe2   :  { %2423 = vmatpush.bf16.msra.mxu0 %v4431_v21  ;;  %2519 = vmatpush.bf16.msra.mxu1 %v4439_v22  ;;  %v4463_v21 = vld [vmem:[#allocation3 + $0x708] sm:$0xff] }
  0xe3   :  { %2615 = vmatpush.bf16.msra.mxu2 %v4447_v24  ;;  %2711 = vmatpush.bf16.msra.mxu3 %v4455_v25  ;;  %v4471_v22 = vld [vmem:[#allocation3 + $0x748] sm:$0xff] }
  0xe4   :  { %v1095_v20 = vpop.permute.xlu0 %1094  ;;  %v4479_v24 = vld [vmem:[#allocation3 + $0x788] sm:$0xff] }
  0xe5   :  { %v4487_v25 = vld [vmem:[#allocation3 + $0x7c8] sm:$0xff] }
  0xe6   :  { %2424 = vmatpush.bf16.msra.mxu0 %v4430_v30  ;;  %2520 = vmatpush.bf16.msra.mxu1 %v4438_v31  ;;  %v890_v50 = vpop.f32.mrf.mxu0  ;;  %v986_v54 = vpop.f32.mrf.mxu1  ;;  %v4462_v31 = vld [vmem:[#allocation3 + $0x700] sm:$0xff] }
  0xe7   :  { %2616 = vmatpush.bf16.msra.mxu2 %v4446_v32  ;;  %2712 = vmatpush.bf16.msra.mxu3 %v4454_v33  ;;  %v905_v53 = vmul.f32 %v898_v29, %v890_v50  ;;  %v1001_v57 = vmul.f32 %v994_v55, %v986_v54  ;;  %v4470_v32 = vld [vmem:[#allocation3 + $0x740] sm:$0xff] }
  0xe9   :  { %2425 = vmatmul.bf16.vlgmr.msra.gmra.mxu0 %v4828_v44  ;;  %2521 = vmatmul.bf16.vlgmr.msra.gmra.mxu1 %v4828_v44  ;;  %v907_v56 = vadd.f32 %v905_v53, %v811_v52 }
  0xea   :  { %2801 = vmatpush.bf16.msrb.mxu0 %v4469_v34  ;;  %2897 = vmatpush.bf16.msrb.mxu1 %v4477_v35  ;;  %v4478_v34 = vld [vmem:[#allocation3 + $0x780] sm:$0xff] }
  0xeb   :  { %2993 = vmatpush.bf16.msrb.mxu2 %v4485_v36  ;;  %3089 = vmatpush.bf16.msrb.mxu3 %v4493_v37  ;;  %v1003_v61 = vadd.f32 %v1001_v57, %v907_v56  ;;  %v4486_v35 = vld [vmem:[#allocation3 + $0x7c0] sm:$0xff] }
  0xec   :  { %2617 = vmatmul.bf16.vlgmr.msra.gmra.mxu2 %v4828_v44  ;;  %2713 = vmatmul.bf16.vlgmr.msra.gmra.mxu3 %v4828_v44  ;;  %v1282_v36 = vpop.permute.xlu0 %1281 }
  0xee   :  { %2802 = vmatpush.bf16.msrb.mxu0 %v4468_v38  ;;  %2898 = vmatpush.bf16.msrb.mxu1 %v4476_v39  ;;  %v892_v6 = vpop.f32.mrf.mxu0  ;;  %v988_v9 = vpop.f32.mrf.mxu1 }
  0xef   :  { %2994 = vmatpush.bf16.msrb.mxu2 %v4484_v40  ;;  %3090 = vmatpush.bf16.msrb.mxu3 %v4492_v41  ;;  %v1082_v1 = vpop.f32.mrf.mxu2  ;;  %v1178_v5 = vpop.f32.mrf.mxu3  ;;  %v906_v8 = vmul.f32 %v903_v42, %v892_v6  ;;  %v1002_v13 = vmul.f32 %v999_v45, %v988_v9 }
  0xf0   :  { %v1097_v4 = vmul.f32 %v1090_v62, %v1082_v1  ;;  %v1193_v11 = vmul.f32 %v1186_v7, %v1178_v5  ;;  %v1287_v41 = vpop.permute.xlu1 %1286 }
  0xf1   :  { %v908_v12 = vadd.f32 %v906_v8, %v4822_v28  ;;  %v1191_v28 = vpop.permute.xlu2 %1190 }
  0xf2   :  { %2803 = vmatpush.bf16.msrb.mxu0 %v4467_v46  ;;  %2899 = vmatpush.bf16.msrb.mxu1 %v4475_v47  ;;  %v1099_v10 = vadd.f32 %v1097_v4, %v1003_v61 }
  0xf3   :  { %2995 = vmatpush.bf16.msrb.mxu2 %v4483_v48  ;;  %3091 = vmatpush.bf16.msrb.mxu3 %v4491_v49  ;;  %v1004_v19 = vadd.f32 %v1002_v13, %v908_v12 }
  0xf4   :  { %v1195_v16 = vadd.f32 %v1193_v11, %v1099_v10  ;;  %v1383_v42 = vpop.permute.xlu0 %1382 }
  0xf6   :  { %2804 = vmatpush.bf16.msrb.mxu0 %v4466_v51  ;;  %2900 = vmatpush.bf16.msrb.mxu1 %v4474_v58 }
  0xf7   :  { %2996 = vmatpush.bf16.msrb.mxu2 %v4482_v59  ;;  %3092 = vmatpush.bf16.msrb.mxu3 %v4490_v60  ;;  %v1084_v23 = vpop.f32.mrf.mxu2  ;;  %v1180_v27 = vpop.f32.mrf.mxu3 }
  0xf8   :  { %v1098_v26 = vmul.f32 %v1095_v20, %v1084_v23  ;;  %v1194_v30 = vmul.f32 %v1191_v28, %v1180_v27  ;;  %v1474_v45 = vpop.permute.xlu1 %1473 }
  0xf9   :  { %v1378_v40 = vpop.permute.xlu2 %1377 }
  0xfa   :  { %2805 = vmatpush.bf16.msrb.mxu0 %v4465_v63  ;;  %2901 = vmatpush.bf16.msrb.mxu1 %v4473_v0  ;;  %v1100_v29 = vadd.f32 %v1098_v26, %v1004_v19 }
  0xfb   :  { %2997 = vmatpush.bf16.msrb.mxu2 %v4481_v2  ;;  %3093 = vmatpush.bf16.msrb.mxu3 %v4489_v3 }
  0xfc   :  { %v1196_v33 = vadd.f32 %v1194_v30, %v1100_v29  ;;  %v1570_v46 = vpop.permute.xlu0 %1569 }
  0xfe   :  { %2806 = vmatpush.bf16.msrb.mxu0 %v4464_v14  ;;  %2902 = vmatpush.bf16.msrb.mxu1 %v4472_v15 }
  0xff   :  { %2998 = vmatpush.bf16.msrb.mxu2 %v4480_v17  ;;  %3094 = vmatpush.bf16.msrb.mxu3 %v4488_v18 }
 0x100   :  { %v1575_v48 = vpop.permute.xlu1 %1574 }
 0x101   :  { %v1479_v43 = vpop.permute.xlu2 %1478 }
 0x102   :  { %2807 = vmatpush.bf16.msrb.mxu0 %v4463_v21  ;;  %2903 = vmatpush.bf16.msrb.mxu1 %v4471_v22 }
 0x103   :  { %2999 = vmatpush.bf16.msrb.mxu2 %v4479_v24  ;;  %3095 = vmatpush.bf16.msrb.mxu3 %v4487_v25 }
 0x104   :  { %v1671_v49 = vpop.permute.xlu0 %1670 }
 0x106   :  { %2808 = vmatpush.bf16.msrb.mxu0 %v4462_v31  ;;  %2904 = vmatpush.bf16.msrb.mxu1 %v4470_v32  ;;  %v1274_v37 = vpop.f32.mrf.mxu0  ;;  %v1370_v54 = vpop.f32.mrf.mxu1 }
 0x107   :  { %3000 = vmatpush.bf16.msrb.mxu2 %v4478_v34  ;;  %3096 = vmatpush.bf16.msrb.mxu3 %v4486_v35  ;;  %v1289_v38 = vmul.f32 %v1282_v36, %v1274_v37  ;;  %v1385_v14 = vmul.f32 %v1378_v40, %v1370_v54 }
 0x108   :  { %v1762_v52 = vpop.permute.xlu1 %1761 }
 0x109   :  { %2809 = vmatmul.bf16.vlgmr.msrb.gmra.mxu0 %v4828_v44  ;;  %2905 = vmatmul.bf16.vlgmr.msrb.gmra.mxu1 %v4828_v44  ;;  %v1291_v39 = vadd.f32 %v1289_v38, %v1195_v16  ;;  %v1666_v47 = vpop.permute.xlu2 %1665 }
 0x10a   :  { %3001 = vmatmul.bf16.vlgmr.msrb.gmra.mxu2 %v4828_v44  ;;  %3097 = vmatmul.bf16.vlgmr.msrb.gmra.mxu3 %v4828_v44 }
 0x10b   :  { %v1387_v21 = vadd.f32 %v1385_v14, %v1291_v39 }
 0x10c   :  { %v1858_v53 = vpop.permute.xlu0 %1857 }
 0x10e   :  { %v1276_v58 = vpop.f32.mrf.mxu0  ;;  %v1372_v59 = vpop.f32.mrf.mxu1 }
 0x10f   :  { %v1466_v44 = vpop.f32.mrf.mxu2  ;;  %v1562_v57 = vpop.f32.mrf.mxu3  ;;  %v1290_v10 = vmul.f32 %v1287_v41, %v1276_v58  ;;  %v1386_v22 = vmul.f32 %v1383_v42, %v1372_v59 }
 0x110   :  { %v1863_v56 = vpop.permute.xlu1 %1862  ;;  %v1481_v15 = vmul.f32 %v1474_v45, %v1466_v44  ;;  %v1577_v26 = vmul.f32 %v1570_v46, %v1562_v57 }
 0x111   :  { %v1767_v50 = vpop.permute.xlu2 %1766  ;;  %v1292_v16 = vadd.f32 %v1290_v10, %v1196_v33 }
 0x112   :  { %v1483_v24 = vadd.f32 %v1481_v15, %v1387_v21 }
 0x113   :  { %v1388_v25 = vadd.f32 %v1386_v22, %v1292_v16 }
 0x114   :  { %v4840_v51 = vpop.permute.xlu0 %1958  ;;  %v1579_v31 = vadd.f32 %v1577_v26, %v1483_v24 }
 0x117   :  { %v1468_v62 = vpop.f32.mrf.mxu2  ;;  %v1564_v63 = vpop.f32.mrf.mxu3 }
 0x118   :  { %v2050_v61 = vpop.permute.xlu1 %2049  ;;  %v1482_v23 = vmul.f32 %v1479_v43, %v1468_v62  ;;  %v1578_v32 = vmul.f32 %v1575_v48, %v1564_v63 }
 0x119   :  { %v1954_v55 = vpop.permute.xlu2 %1953 }
 0x11a   :  { %v1484_v27 = vadd.f32 %v1482_v23, %v1388_v25 }
 0x11c   :  { %v4844_v0 = vpop.permute.xlu0 %2145  ;;  %v1580_v33 = vadd.f32 %v1578_v32, %v1484_v27 }
 0x120   :  { %v4846_v5 = vpop.permute.xlu1 %2150 }
 0x121   :  { %v4842_v60 = vpop.permute.xlu2 %2054 }
 0x124   :  { %v4848_v7 = vpop.permute.xlu0 %2246 }
 0x126   :  { %v1658_v1 = vpop.f32.mrf.mxu0  ;;  %v1754_v2 = vpop.f32.mrf.mxu1 }
 0x127   :  { %v1673_v28 = vmul.f32 %v1666_v47, %v1658_v1  ;;  %v1769_v39 = vmul.f32 %v1762_v52, %v1754_v2 }
 0x128   :  { %v4850_v13 = vpop.permute.xlu1 %2337 }
 0x129   :  { %v2242_v6 = vpop.permute.xlu2 %2241  ;;  %v1675_v36 = vadd.f32 %v1673_v28, %v1579_v31 }
 0x12b   :  { %v1771_v45 = vadd.f32 %v1769_v39, %v1675_v36 }
 0x12c   :  { %v2434_v20 = vpop.permute.xlu0 %2433 }
 0x12e   :  { %v1660_v8 = vpop.f32.mrf.mxu0  ;;  %v1756_v9 = vpop.f32.mrf.mxu1 }
 0x12f   :  { %v1850_v3 = vpop.f32.mrf.mxu2  ;;  %v1946_v4 = vpop.f32.mrf.mxu3  ;;  %v1674_v34 = vmul.f32 %v1671_v49, %v1660_v8  ;;  %v1770_v54 = vmul.f32 %v1767_v50, %v1756_v9 }
 0x130   :  { %v2439_v35 = vpop.permute.xlu1 %2438  ;;  %v1865_v42 = vmul.f32 %v1858_v53, %v1850_v3  ;;  %v1961_v59 = vmul.f32 %v1954_v55, %v1946_v4 }
 0x131   :  { %v4852_v19 = vpop.permute.xlu2 %2342  ;;  %v1676_v43 = vadd.f32 %v1674_v34, %v1580_v33 }
 0x132   :  { %v1867_v44 = vadd.f32 %v1865_v42, %v1771_v45 }
 0x133   :  { %v1772_v47 = vadd.f32 %v1770_v54, %v1676_v43 }
 0x134   :  { %v2535_v41 = vpop.permute.xlu0 %2534  ;;  %v1963_v8 = vadd.f32 %v1961_v59, %v1867_v44 }
 0x137   :  { %v1852_v11 = vpop.f32.mrf.mxu2  ;;  %v1948_v12 = vpop.f32.mrf.mxu3 }
 0x138   :  { %v1866_v46 = vmul.f32 %v1863_v56, %v1852_v11  ;;  %v2626_v1 = vpop.permute.xlu1 %2625  ;;  %v1962_v10 = vmul.f32 %v4840_v51, %v1948_v12 }
 0x139   :  { %v2530_v40 = vpop.permute.xlu2 %2529 }
 0x13a   :  { %v1868_v48 = vadd.f32 %v1866_v46, %v1772_v47 }
 0x13c   :  { %v2722_v2 = vpop.permute.xlu0 %2721  ;;  %v1964_v3 = vadd.f32 %v1962_v10, %v1868_v48 }
 0x141   :  { %v2631_v53 = vpop.permute.xlu2 %2630 }
 0x146   :  { %v2042_v17 = vpop.f32.mrf.mxu0  ;;  %v2138_v18 = vpop.f32.mrf.mxu1 }
 0x147   :  { %v2057_v49 = vmul.f32 %v2050_v61, %v2042_v17  ;;  %v2153_v56 = vmul.f32 %v4844_v0, %v2138_v18  ;;  %v2823_v0 = vpop.permute.xlu0 %2822 }
 0x149   :  { %v2059_v50 = vadd.f32 %v2057_v49, %v1963_v8  ;;  %v2818_v24 = vpop.permute.xlu2 %2817 }
 0x14b   :  { %v2155_v4 = vadd.f32 %v2153_v56, %v2059_v50 }
 0x14e   :  { %v2044_v37 = vpop.f32.mrf.mxu0  ;;  %v2140_v38 = vpop.f32.mrf.mxu1 }
 0x14f   :  { %v2234_v29 = vpop.f32.mrf.mxu2  ;;  %v2330_v30 = vpop.f32.mrf.mxu3  ;;  %v2058_v52 = vmul.f32 %v4842_v60, %v2044_v37  ;;  %v2154_v61 = vmul.f32 %v4846_v5, %v2140_v38 }
 0x150   :  { %v2249_v9 = vmul.f32 %v2242_v6, %v2234_v29  ;;  %v2727_v60 = vpop.permute.xlu1 %2726  ;;  %v2345_v21 = vmul.f32 %v4850_v13, %v2330_v30  ;;  %v3010_v39 = vpop.permute.xlu0 %3009 }
 0x151   :  { %v2060_v11 = vadd.f32 %v2058_v52, %v1964_v3  ;;  %v2919_v38 = vpop.permute.xlu2 %2918 }
 0x152   :  { %v2251_v16 = vadd.f32 %v2249_v9, %v2155_v4 }
 0x153   :  { %v2156_v17 = vadd.f32 %v2154_v61, %v2060_v11 }
 0x154   :  { %v2347_v6 = vadd.f32 %v2345_v21, %v2251_v16 }
 0x157   :  { %v2236_v57 = vpop.f32.mrf.mxu2  ;;  %v2332_v58 = vpop.f32.mrf.mxu3 }
 0x158   :  { %v2250_v15 = vmul.f32 %v4848_v7, %v2236_v57  ;;  %v2346_v18 = vmul.f32 %v4852_v19, %v2332_v58  ;;  %v2914_v30 = vpop.permute.xlu1 %2913  ;;  %v3111_v3 = vpop.permute.xlu0 %3110 }
 0x15a   :  { %v2252_v22 = vadd.f32 %v2250_v15, %v2156_v17 }
 0x15c   :  { %v2348_v26 = vadd.f32 %v2346_v18, %v2252_v22 }
 0x160   :  { %v3015_v49 = vpop.permute.xlu1 %3014 }
 0x166   :  { %v2426_v62 = vpop.f32.mrf.mxu0  ;;  %v2522_v63 = vpop.f32.mrf.mxu1 }
 0x167   :  { %v2441_v23 = vmul.f32 %v2434_v20, %v2426_v62  ;;  %v2537_v7 = vmul.f32 %v2530_v40, %v2522_v63 }
 0x169   :  { %v2443_v27 = vadd.f32 %v2441_v23, %v2347_v6 }
 0x16b   :  { %v2539_v33 = vadd.f32 %v2537_v7, %v2443_v27 }
 0x16e   :  { %v2428_v51 = vpop.f32.mrf.mxu0  ;;  %v2524_v12 = vpop.f32.mrf.mxu1 }
 0x16f   :  { %v2618_v14 = vpop.f32.mrf.mxu2  ;;  %v2714_v55 = vpop.f32.mrf.mxu3  ;;  %v2442_v25 = vmul.f32 %v2439_v35, %v2428_v51  ;;  %v2538_v36 = vmul.f32 %v2535_v41, %v2524_v12 }
 0x170   :  { %v2633_v29 = vmul.f32 %v2626_v1, %v2618_v14  ;;  %v2729_v42 = vmul.f32 %v2722_v2, %v2714_v55  ;;  %v3106_v2 = vpop.permute.xlu2 %3105 }
 0x171   :  { %v2444_v31 = vadd.f32 %v2442_v25, %v2348_v26 }
 0x172   :  { %v2635_v20 = vadd.f32 %v2633_v29, %v2539_v33 }
 0x173   :  { %v2540_v37 = vadd.f32 %v2538_v36, %v2444_v31 }
 0x174   :  { %v2731_v54 = vadd.f32 %v2729_v42, %v2635_v20 }
 0x177   :  { %v2620_v5 = vpop.f32.mrf.mxu2  ;;  %v2716_v28 = vpop.f32.mrf.mxu3 }
 0x178   :  { %v2634_v13 = vmul.f32 %v2631_v53, %v2620_v5  ;;  %v2730_v46 = vmul.f32 %v2727_v60, %v2716_v28 }
 0x17a   :  { %v2636_v19 = vadd.f32 %v2634_v13, %v2540_v37 }
 0x17c   :  { %v2732_v47 = vadd.f32 %v2730_v46, %v2636_v19 }
 0x186   :  { %v2810_v32 = vpop.f32.mrf.mxu0  ;;  %v2906_v34 = vpop.f32.mrf.mxu1 }
 0x187   :  { %v2825_v35 = vmul.f32 %v2818_v24, %v2810_v32  ;;  %v2921_v59 = vmul.f32 %v2914_v30, %v2906_v34 }
 0x189   :  { %v2827_v57 = vadd.f32 %v2825_v35, %v2731_v54 }
 0x18b   :  { %v2923_v62 = vadd.f32 %v2921_v59, %v2827_v57 }
 0x18d   :  { %v3002_v43 = vpop.f32.mrf.mxu2  ;;  %v3098_v45 = vpop.f32.mrf.mxu3 }
 0x18e   :  { %v2812_v40 = vpop.f32.mrf.mxu0  ;;  %v2908_v58 = vpop.f32.mrf.mxu1  ;;  %v3017_v41 = vmul.f32 %v3010_v39, %v3002_v43  ;;  %v3113_v50 = vmul.f32 %v3106_v2, %v3098_v45 }
 0x18f   :  { %v2826_v44 = vmul.f32 %v2823_v0, %v2812_v40  ;;  %v2922_v63 = vmul.f32 %v2919_v38, %v2908_v58 }
 0x190   :  { %v3019_v10 = vadd.f32 %v3017_v41, %v2923_v62 }
 0x191   :  { %v2828_v48 = vadd.f32 %v2826_v44, %v2732_v47 }
 0x192   :  { %v3115_v11 = vadd.f32 %v3113_v50, %v3019_v10 }
 0x193   :  { %v2924_v52 = vadd.f32 %v2922_v63, %v2828_v48 }
 0x195   :  { %v3004_v1 = vpop.f32.mrf.mxu2  ;;  %v3100_v8 = vpop.f32.mrf.mxu3 }
 0x196   :  { %v3018_v53 = vmul.f32 %v3015_v49, %v3004_v1  ;;  %v3114_v9 = vmul.f32 %v3111_v3, %v3100_v8 }
 0x198   :  { %v3020_v56 = vadd.f32 %v3018_v53, %v2924_v52 }
 0x19a   :  { %v3116_v14 = vadd.f32 %v3114_v9, %v3020_v56 }
 0x19c   :  { %v4497_v55 = vpack.c.bf16 %v3116_v14, %v3115_v11 }
 0x19e   :  { %4498 = vst [vmem:[#allocation6] sm:$0xff] %v4497_v55  }
 0x19f   :  { %3140 = dma.vmem_to_hbm [thread:$0]  %s3133_s20, 128, %s3135_s22, [#allocation5], %s4561_s17, %s4561_s17, %s4562_s18  }
 0x1a0   :  { %4558 = dma.done.wait [#allocation5], 128  }
 0x1a1   :  { %4559 = vsyncadd [#allocation5], 4294967168 }
 0x1a2   :  { %3145 = vsyncpa [#allocation4], 1 }
 0x1a3   :  { %3146 = vsyncpa [#allocation5], 1 }

</bundles_post_ra>
